<compile_context>
chip_gen: v6e
topology: v6e:2x2x1
jax: 0.10.0
libtpu: 0.0.40
codegen_flags: <defaults>
</compile_context>

<pallas_src>
import math

import jax
import jax.numpy as jnp
from jax import lax
from jax.experimental import pallas as pl
from jax.experimental.pallas import tpu as pltpu

VERY_NEG_NUMBER = -100000000000.0
NEG_INF_ATTN = -1e10      # -10000000000.0 in the torch code
BIG_NEIGHBOR = 1e10       # num_neighbor[num_neighbor == 0] = 1e10


# ----------------------------------------------------------------------------
# Pallas kernel: whole graph-reasoning loop for one batch element
# ----------------------------------------------------------------------------
def make_graphmem_kernel(num_layer, entity_dim):
    # attention scale uses the ORIGINAL entity_dim (pre lane padding)
    inv_sqrt_d = 1.0 / math.sqrt(entity_dim)
    f32 = jnp.float32
    bf16 = jnp.bfloat16

    def _softmax_lanes(x):
        m = jnp.max(x, axis=1, keepdims=True)
        e = jnp.exp(x - m)
        return e * pl.reciprocal(jnp.sum(e, axis=1, keepdims=True), approx=True)

    def _matT(a, b):      # a @ b.T : (m,k),(n,k)->(m,n)
        return lax.dot_general(a, b, (((1,), (1,)), ((), ())),
                               preferred_element_type=f32)

    def _outer(a, b):     # (1,m),(1,n)->(m,n) rank-1
        return lax.dot_general(a, b, (((0,), (0,)), ((), ())),
                               preferred_element_type=f32)

    def kernel(ent_ref, fac_ref, rel_ref, qh_ref, qn_ref, st0_ref, qm_ref,
               emq_ref, fm_ref, start_ref, invnn_ref, e2e_ref, f2e_ref,
               rev_ref, e2f_ref, membd_ref, out_ref):
        ent = ent_ref[0]              # (E, D) bf16  local_entity_emb
        fac = fac_ref[0]              # (F, D) bf16  local_fact_emb
        rel = rel_ref[...]            # (R, D) bf16  local_rel_emb (shared)
        qh0 = qh_ref[0]               # (Q, D) bf16  query_hidden_emb
        qn = qn_ref[0]                # (1, D) f32   query_node_emb
        state = st0_ref[0]            # (1, D) f32   start @ ent (hoisted)
        qm = qm_ref[0]                # (1, Q) f32   query_mask
        emq_col = emq_ref[0]          # (E, 1) f32   entity_mask / sum(q_mask)
        fm_col = fm_ref[0]            # (F, 1) f32   kb_fact_rel_mask
        start_col = start_ref[0]      # (E, 1) f32   start_entities
        inv_nn_col = invnn_ref[0]     # (E, 1) f32   1 / num_neighbor (hoisted)
        e2e = e2e_ref[0]              # (E, E) bf16
        f2e = f2e_ref[0]              # (F, E) bf16
        f2e_rev = rev_ref[0]          # (F, E) bf16
        e2f = e2f_ref[0]              # (E, F) bf16
        membd = membd_ref[...]        # (1, D) f32   mask_embd (shared)

        E = ent.shape[0]
        D = ent.shape[1]
        ones_d = jnp.ones((1, D), f32)
        neg_qm_row = NEG_INF_ATTN * (1.0 - qm)         # (1, Q) loop-invariant

        def layer(scale, state, qn, qh, scores_col, start_col, traverse_col):
            qh16 = qh.astype(bf16)

            # --- query/state -> relation attention (one fused M=1 matvec)
            rel_sc = _matT((qn + state).astype(bf16), rel)          # (1, R)
            q2r = _softmax_lanes(rel_sc * inv_sqrt_d)
            aggr = jnp.dot(q2r.astype(bf16), rel,
                           preferred_element_type=f32)              # (1, D)
            state = state + aggr
            qn = qn - aggr

            # --- frontier expansion + prev-score propagation share one e2e pass
            sc_pair = jnp.concatenate([start_col, scores_col],
                                      axis=1).astype(bf16)          # (E, 2)
            ee = jnp.dot(e2e, sc_pair, preferred_element_type=f32)  # (E, 2)
            end_ent_col = ee[:, 0:1] + traverse_col
            end_ent_col = jnp.where(end_ent_col > 0.0, 1.0, end_ent_col)
            end_ent_col = end_ent_col - traverse_col                # (E, 1)
            prev_s_col = ee[:, 1:2] * inv_nn_col                    # (E, 1)

            trav_f_col = jnp.dot(f2e, start_col.astype(bf16),
                                 preferred_element_type=f32)        # (F, 1)
            end_f_col = jnp.dot(f2e_rev, end_ent_col.astype(bf16),
                                preferred_element_type=f32)         # (F, 1)
            ft_col = fm_col * trav_f_col * end_f_col                # (F, 1)

            # --- fact <-> query-word attention; masks are VPU broadcasts
            frw_raw = _matT(fac, qh16)                              # (F, Q)
            frw_masked = frw_raw * qm * ft_col                      # (F, Q)
            attn = (frw_masked + NEG_INF_ATTN * (1.0 - ft_col)
                    + neg_qm_row) * inv_sqrt_d
            f2w = _softmax_lanes(attn)                              # (F, Q)
            # frs == (weighted_fact * fac).sum(-1) == sum_q f2w * (fac @ qh.T)
            frs_col = jnp.sum(f2w * frw_raw, axis=1,
                              keepdims=True) * ft_col               # (F, 1)
            # (word2fact_attn / weighted_word / word_scores of the torch code
            #  are never consumed -> skipped.)

            # --- entity-score propagation
            new_s_col = jnp.dot(e2f, frs_col.astype(bf16),
                                preferred_element_type=f32)         # (E, 1)
            # init_s and state@ent.T share one (E,D)x(2,D)^T MXU pass
            qh_sum = jnp.sum(qh, axis=0, keepdims=True)             # (1, D)
            es = _matT(ent, jnp.concatenate([qh_sum, state],
                                            axis=0).astype(bf16))   # (E, 2)
            init_s_col = es[:, 0:1] * emq_col
            state_sc_col = es[:, 1:2]

            end_sc_col = ((new_s_col + prev_s_col) * scale
                          + init_s_col) * end_ent_col
            scores_col = scores_col + end_sc_col + state_sc_col

            # --- soft-mask the query words: qh <- (1-sm)^2*qh + sm*mask_embd
            sm = jax.nn.sigmoid(jnp.sum(frw_masked, axis=0,
                                        keepdims=True))             # (1, Q)
            coef = (1.0 - sm) * (1.0 - sm)
            qh = _outer(coef, ones_d) * qh + _outer(sm, membd)      # (Q, D)

            traverse_col = traverse_col + end_ent_col
            return state, qn, qh, scores_col, end_ent_col, traverse_col

        carry = (state, qn, qh0.astype(f32), jnp.zeros((E, 1), f32),
                 start_col, start_col)
        if num_layer <= 4:
            for i in range(num_layer):
                carry = layer(1.0 if i == 0 else 0.5, *carry)
        else:
            def body(i, c):
                return layer(jnp.where(i == 0, 1.0, 0.5), *c)
            carry = lax.fori_loop(0, num_layer, body, carry)

        out_ref[0] = carry[3]

    return kernel


# ----------------------------------------------------------------------------
# wrapper: padding / dtype staging / pallas_call
# ----------------------------------------------------------------------------
def _round_up(n, m):
    return ((n + m - 1) // m) * m


def _pad_axis(x, axis, target):
    size = x.shape[axis]
    if size == target:
        return x
    widths = [(0, 0)] * x.ndim
    widths[axis] = (0, target - size)
    return jnp.pad(x, widths)


def graphmem_scores_pallas(ent_emb, fact_emb, rel_emb, qh, qn, qm, em, fm,
                           start, e2e, f2e, f2e_rev, e2f, mask_embd,
                           num_layer, entity_dim):
    f32, bf16 = jnp.float32, jnp.bfloat16
    B, E0, D0 = ent_emb.shape
    F0 = fact_emb.shape[1]
    R = rel_emb.shape[0]
    Q = qh.shape[1]

    # lane-dense D, sublane-aligned E/F (zero padding is exact).
    D = _round_up(D0, 128)
    E = _round_up(E0, 8)
    F = _round_up(F0, 8)

    # loop-invariant precompute, exact f32, hoisted out of the kernel
    qsum = jnp.sum(qm.astype(f32), axis=1, keepdims=True)             # (B,1)
    emq = em.astype(f32) / qsum                                       # (B,E0)
    # num_neighbor: torch sparse.sum(e2e, dim=1) -> reduce over HEAD axis
    nn = jnp.sum(e2e.astype(f32), axis=1)                             # (B,E0)
    inv_nn = 1.0 / jnp.where(nn == 0.0, BIG_NEIGHBOR, nn)             # (B,E0)
    state0 = jnp.einsum('be,bed->bd', start.astype(f32),
                        ent_emb.astype(f32))                          # (B,D0)

    col = lambda x, n: _pad_axis(x.astype(f32).reshape(B, -1, 1), 1, n)

    args = (
        _pad_axis(_pad_axis(ent_emb, 1, E), 2, D).astype(bf16),       # ent
        _pad_axis(_pad_axis(fact_emb, 1, F), 2, D).astype(bf16),      # fac
        _pad_axis(rel_emb, 1, D).astype(bf16),                        # rel
        _pad_axis(qh, 2, D).astype(bf16),                             # qh
        _pad_axis(qn.reshape(B, 1, D0), 2, D).astype(f32),            # qn
        _pad_axis(state0.reshape(B, 1, D0), 2, D).astype(f32),        # state0
        qm.reshape(B, 1, Q).astype(f32),                              # qm
        col(emq, E),                                                  # emq
        col(fm, F),                                                   # fm
        col(start, E),                                                # start
        col(inv_nn, E),                                               # 1/nn
        _pad_axis(_pad_axis(e2e, 1, E), 2, E).astype(bf16),           # e2e
        _pad_axis(_pad_axis(f2e, 1, F), 2, E).astype(bf16),           # f2e
        _pad_axis(_pad_axis(f2e_rev, 1, F), 2, E).astype(bf16),       # rev
        _pad_axis(_pad_axis(e2f, 1, E), 2, F).astype(bf16),           # e2f
        _pad_axis(mask_embd.reshape(1, D0), 1, D).astype(f32),        # membd
    )

    batched = lambda s: pl.BlockSpec((1,) + s, lambda b: (b, 0, 0))
    shared = lambda s: pl.BlockSpec(s, lambda b: (0, 0))
    in_specs = [
        batched((E, D)), batched((F, D)), shared((R, D)),
        batched((Q, D)), batched((1, D)), batched((1, D)),
        batched((1, Q)), batched((E, 1)), batched((F, 1)),
        batched((E, 1)), batched((E, 1)),
        batched((E, E)), batched((F, E)), batched((F, E)),
        batched((E, F)), shared((1, D)),
    ]

    # explicit VMEM budget: double-buffered bf16 blocks + f32 working set.
    # TODO(synk): for graphs whose adjacency blocks exceed ~40 MiB (v7x has
    #             64 MiB physical VMEM), tile F/E of f2e/f2e_rev/e2f with an
    #             inner grid axis and a scores accumulator.
    blk_bytes = (2 * (E * D + F * D + Q * D + E * E + 3 * F * E)
                 + 4 * (2 * D + Q + 4 * E + F) + 2 * R * D + 4 * D)
    scratch_bytes = 4 * (3 * F * Q + 3 * Q * D + 8 * E + 8 * F + 4 * D)
    vmem_limit = int(min(max(2 * blk_bytes + scratch_bytes, 32 * 1024 * 1024),
                         48 * 1024 * 1024))

    kernel = make_graphmem_kernel(num_layer, entity_dim)
    out = pl.pallas_call(
        kernel,
        out_shape=jax.ShapeDtypeStruct((B, E, 1), f32),
        grid_spec=pltpu.PrefetchScalarGridSpec(
            num_scalar_prefetch=0,
            grid=(B,),
            in_specs=in_specs,
            out_specs=pl.BlockSpec((1, E, 1), lambda b: (b, 0, 0)),
        ),
        compiler_params=pltpu.CompilerParams(
            dimension_semantics=("parallel",),
            vmem_limit_bytes=vmem_limit),
    )(*args)
    return out[:, :E0, 0]


# ----------------------------------------------------------------------------
# pure-JAX reference of the kernel compute (mirrors the torch code) for checks
# ----------------------------------------------------------------------------
def graphmem_scores_ref(ent_emb, fact_emb, rel_emb, qh, qn, qm, em, fm,
                        start, e2e, f2e, f2e_rev, e2f, mask_embd,
                        num_layer, entity_dim):
    inv_sqrt_d = 1.0 / math.sqrt(entity_dim)
    state = jnp.einsum('be,bed->bd', start, ent_emb)
    # torch: sparse.sum(e2e, dim=1) -> reduce over HEAD axis of (B, head, tail)
    nn_sum = e2e.sum(axis=1)
    nn = jnp.where(nn_sum == 0.0, BIG_NEIGHBOR, nn_sum)
    scores = jnp.zeros_like(start)
    traverse = start
    qsum = qm.sum(axis=1, keepdims=True)
    for i in range(num_layer):
        init_s = jnp.einsum('bqd,bed->be', qh, ent_emb) * em / qsum
        q_rel = jnp.einsum('bd,rd->br', qn, rel_emb)
        s_rel = jnp.einsum('bd,rd->br', state, rel_emb)
        q2r = jax.nn.softmax((q_rel + s_rel) * inv_sqrt_d, axis=1)
        aggr = q2r @ rel_emb
        state = state + aggr
        qn = qn - aggr
        end_ent = jnp.einsum('bht,bt->bh', e2e, start) + traverse
        end_ent = jnp.where(end_ent > 0.0, 1.0, end_ent) - traverse
        trav_f = jnp.einsum('bfe,be->bf', f2e, start)
        end_f = jnp.einsum('bfe,be->bf', f2e_rev, end_ent)
        trav_f = trav_f * end_f
        ft = fm * trav_f
        frw = jnp.einsum('bfd,bqd->bfq', fact_emb, qh)
        frw = frw * qm[:, None, :] * ft[:, :, None]
        attn = (frw + NEG_INF_ATTN * (1.0 - ft)[:, :, None]
                + NEG_INF_ATTN * (1.0 - qm)[:, None, :]) * inv_sqrt_d
        f2w = jax.nn.softmax(attn, axis=2)
        wfact = jnp.einsum('bfq,bqd->bfd', f2w, qh)
        frs = (wfact * fact_emb).sum(axis=2) * ft
        new_s = jnp.einsum('bef,bf->be', e2f, frs)
        prev_s = jnp.einsum('bht,bt->bh', e2e, scores) * (1.0 / nn)
        scale = 1.0 if i == 0 else 0.5
        end_sc = ((new_s + prev_s) * scale + init_s) * end_ent
        scores = scores + end_sc + jnp.einsum('bd,bed->be', state, ent_emb)
        sm = jax.nn.sigmoid(frw.sum(axis=1))
        qh = (1.0 - sm)[:, :, None] * qh
        qh = (1.0 - sm)[:, :, None] * qh + sm[:, :, None] * mask_embd[None, None, :]
        start = end_ent
        traverse = traverse + end_ent
    return scores


# ----------------------------------------------------------------------------
# plain-JAX glue: embeddings, bi-LSTM query encoder, linear projections, loss
# ----------------------------------------------------------------------------
def bilstm(x, params, hidden_size):
    """PyTorch nn.LSTM(batch_first=True, bidirectional=True) with zero init."""
    H = hidden_size

    def run(x_dir, w_ih, w_hh, b_ih, b_hh):
        B = x_dir.shape[0]

        def step(carry, xt):
            h, c = carry
            g = xt @ w_ih.T + b_ih + h @ w_hh.T + b_hh   # gate order: i,f,g,o
            i = jax.nn.sigmoid(g[:, 0:H])
            f = jax.nn.sigmoid(g[:, H:2 * H])
            gg = jnp.tanh(g[:, 2 * H:3 * H])
            o = jax.nn.sigmoid(g[:, 3 * H:4 * H])
            c = f * c + i * gg
            h = o * jnp.tanh(c)
            return (h, c), h

        init = (jnp.zeros((B, H), jnp.float32), jnp.zeros((B, H), jnp.float32))
        (h_last, _), hs = lax.scan(step, init, jnp.swapaxes(x_dir, 0, 1))
        return jnp.swapaxes(hs, 0, 1), h_last

    out_f, h_f = run(x, *params['fwd'])
    out_b, h_b = run(x[:, ::-1, :], *params['bwd'])
    out_b = out_b[:, ::-1, :]
    out = jnp.concatenate([out_f, out_b], axis=-1)        # (B, T, 2H)
    h_n = jnp.stack([h_f, h_b], axis=0)                   # (2, B, H)
    return out, h_n


def init_params(key, cfg):
    D = cfg['entity_dim']
    W = cfg['word_dim']
    H = D
    ks = jax.random.split(key, 16)
    nrm = lambda k, shape, s=0.1: jax.random.normal(k, shape, jnp.float32) * s

    p = {}
    p['word_emb'] = nrm(ks[0], (cfg['num_word'] + 1, W)).at[cfg['num_word']].set(0.0)
    p['ent_emb'] = nrm(ks[1], (cfg['num_entity'] + 1, W)).at[cfg['num_entity']].set(0.0)
    p['rel_emb'] = nrm(ks[2], (cfg['num_relation'] + 1, 2 * W)).at[cfg['num_relation']].set(0.0)
    p['rel_lin_w'] = nrm(ks[3], (D, 2 * W))
    p['rel_lin_b'] = nrm(ks[4], (D,))
    p['lstm'] = {
        'fwd': (nrm(ks[5], (4 * H, W)), nrm(ks[6], (4 * H, H)),
                nrm(ks[7], (4 * H,)), nrm(ks[8], (4 * H,))),
        'bwd': (nrm(ks[9], (4 * H, W)), nrm(ks[10], (4 * H, H)),
                nrm(ks[11], (4 * H,)), nrm(ks[12], (4 * H,))),
    }
    p['mask_embd'] = jax.random.uniform(ks[13], (D,), jnp.float32)
    return p


def simple_graphmem_forward(params, batch, cfg):
    (local_entity, q2e_adj_mat, kb_adj_dense,
     kb_fact_rel, query_text, answer_dist) = batch
    fact2entity_mat, fact2entity_rev_mat, entity2fact_mat, entity2entity_mat = kb_adj_dense
    D = cfg['entity_dim']

    local_entity_mask = (local_entity != cfg['num_entity']).astype(jnp.float32)
    kb_fact_rel_mask = (kb_fact_rel != cfg['num_relation']).astype(jnp.float32)
    query_mask = (query_text != cfg['num_word']).astype(jnp.float32)

    # dropout layers are identity in eval mode
    query_word_emb = params['word_emb'][query_text]                  # (B, Q, W)
    out, h_n = bilstm(query_word_emb, params['lstm'], D)
    query_hidden_emb = (out[:, :, :D] + out[:, :, D:]) / 2.0         # (B, Q, D)
    query_node_emb = h_n.mean(axis=0)                                # (B, D)

    local_entity_emb = params['ent_emb'][local_entity]               # (B, E, D)
    rel_lin = lambda x: x @ params['rel_lin_w'].T + params['rel_lin_b']
    local_fact_emb = rel_lin(params['rel_emb'][kb_fact_rel])         # (B, F, D)
    local_rel_emb = rel_lin(params['rel_emb'])                       # (R, D)

    start_entities = q2e_adj_mat[:, :, 0].astype(jnp.float32)        # (B, E)

    kernel_args = (local_entity_emb, local_fact_emb, local_rel_emb,
                   query_hidden_emb, query_node_emb, query_mask,
                   local_entity_mask, kb_fact_rel_mask, start_entities,
                   entity2entity_mat, fact2entity_mat, fact2entity_rev_mat,
                   entity2fact_mat, params['mask_embd'])

    entity_scores = graphmem_scores_pallas(*kernel_args,
                                           num_layer=cfg['num_layer'],
                                           entity_dim=D)
    ref_scores = graphmem_scores_ref(*kernel_args,
                                     num_layer=cfg['num_layer'],
                                     entity_dim=D)

    # BCEWithLogitsLoss (mean), masked prediction head
    x = entity_scores
    y = answer_dist.astype(jnp.float32)
    loss = jnp.mean(jnp.maximum(x, 0.0) - x * y + jnp.log1p(jnp.exp(-jnp.abs(x))))
    score = entity_scores + (1.0 - local_entity_mask) * VERY_NEG_NUMBER
    pred_dist = jax.nn.sigmoid(score) * local_entity_mask
    pred = jnp.argmax(score, axis=1)
    return loss, pred, pred_dist, entity_scores, ref_scores


# ----------------------------------------------------------------------------
if __name__ == "__main__":
    cfg = dict(num_layer=2, num_relation=6, num_entity=10, num_word=12,
               entity_dim=32, word_dim=32, lstm_dropout=0.0, linear_dropout=0.0)
    B, E, F, Q = 2, 8, 8, 8

    key = jax.random.PRNGKey(0)
    kp, kd = jax.random.split(key)
    params = init_params(kp, cfg)

    kds = jax.random.split(kd, 8)
    local_entity = jax.random.randint(kds[0], (B, E), 0, cfg['num_entity'])
    local_entity = local_entity.at[:, -1].set(cfg['num_entity'])       # padding entity
    kb_fact_rel = jax.random.randint(kds[1], (B, F), 0, cfg['num_relation'])
    kb_fact_rel = kb_fact_rel.at[:, -1].set(cfg['num_relation'])       # padding fact
    query_text = jax.random.randint(kds[2], (B, Q), 0, cfg['num_word'])
    query_text = query_text.at[:, -2:].set(cfg['num_word'])            # padding words
    answer_dist = (jax.random.uniform(kds[3], (B, E)) > 0.7).astype(jnp.float32)

    seed_ent = jax.random.randint(kds[4], (B,), 0, E)
    q2e_adj_mat = jax.nn.one_hot(seed_ent, E, dtype=jnp.float32)[:, :, None]   # (B,E,1)

    # synthetic KB facts (head/tail per fact) -> dense versions of the sparse mats
    heads = jax.random.randint(kds[5], (B, F), 0, E)
    tails = jax.random.randint(kds[6], (B, F), 0, E)
    h_oh = jax.nn.one_hot(heads, E, dtype=jnp.float32)                 # (B, F, E)
    t_oh = jax.nn.one_hot(tails, E, dtype=jnp.float32)                 # (B, F, E)
    fact2entity_mat = h_oh                                             # (B, F, E)
    fact2entity_rev_mat = t_oh                                         # (B, F, E)
    entity2fact_mat = jnp.swapaxes(t_oh, 1, 2)                         # (B, E, F)
    entity2entity_mat = jnp.clip(jnp.einsum('bfh,bft->bht', h_oh, t_oh), 0.0, 1.0)

    batch = (local_entity, q2e_adj_mat,
             (fact2entity_mat, fact2entity_rev_mat, entity2fact_mat, entity2entity_mat),
             kb_fact_rel, query_text, answer_dist)

    loss, pred, pred_dist, ent_scores, ref_scores = simple_graphmem_forward(
        params, batch, cfg)
    jax.block_until_ready((loss, pred, pred_dist, ent_scores, ref_scores))

    assert jnp.all(jnp.isfinite(ent_scores)), "non-finite kernel output"
    # tolerance reflects deliberate bf16 MXU operands + approx softmax recips
    assert jnp.allclose(ent_scores, ref_scores, rtol=2e-2, atol=2e-2), \
        "Pallas kernel disagrees with pure-JAX reference"
    print("KERNEL_OK")
</pallas_src>

<mosaic_0001>
module attributes {stable_mosaic.version = 11 : i64} {
  func.func @kernel(%arg0: i32, %arg1: memref<1x8x128xbf16, #tpu.memory_space<vmem>>, %arg2: memref<1x8x128xbf16, #tpu.memory_space<vmem>>, %arg3: memref<7x128xbf16, #tpu.memory_space<vmem>>, %arg4: memref<1x8x128xbf16, #tpu.memory_space<vmem>>, %arg5: memref<1x1x128xf32, #tpu.memory_space<vmem>>, %arg6: memref<1x1x128xf32, #tpu.memory_space<vmem>>, %arg7: memref<1x1x8xf32, #tpu.memory_space<vmem>>, %arg8: memref<1x8x1xf32, #tpu.memory_space<vmem>>, %arg9: memref<1x8x1xf32, #tpu.memory_space<vmem>>, %arg10: memref<1x8x1xf32, #tpu.memory_space<vmem>>, %arg11: memref<1x8x1xf32, #tpu.memory_space<vmem>>, %arg12: memref<1x8x8xbf16, #tpu.memory_space<vmem>>, %arg13: memref<1x8x8xbf16, #tpu.memory_space<vmem>>, %arg14: memref<1x8x8xbf16, #tpu.memory_space<vmem>>, %arg15: memref<1x8x8xbf16, #tpu.memory_space<vmem>>, %arg16: memref<1x128xf32, #tpu.memory_space<vmem>>, %arg17: memref<1x8x1xf32, #tpu.memory_space<vmem>>) attributes {dimension_semantics = [#tpu.dimension_semantics<parallel>], iteration_bounds = array<i64: 2>, scalar_prefetch = 0 : i64, scratch_operands = 0 : i64, tpu.core_type = #tpu.core_type<tc>, window_params = [{transform_indices = @transform_0, window_bounds = array<i64: 1, 8, 128>}, {transform_indices = @transform_1, window_bounds = array<i64: 1, 8, 128>}, {pipeline_mode = #tpu.pipeline_mode<synchronous>, transform_indices = @transform_2, window_bounds = array<i64: 7, 128>}, {transform_indices = @transform_3, window_bounds = array<i64: 1, 8, 128>}, {transform_indices = @transform_4, window_bounds = array<i64: 1, 1, 128>}, {transform_indices = @transform_5, window_bounds = array<i64: 1, 1, 128>}, {transform_indices = @transform_6, window_bounds = array<i64: 1, 1, 8>}, {transform_indices = @transform_7, window_bounds = array<i64: 1, 8, 1>}, {transform_indices = @transform_8, window_bounds = array<i64: 1, 8, 1>}, {transform_indices = @transform_9, window_bounds = array<i64: 1, 8, 1>}, {transform_indices = @transform_10, window_bounds = array<i64: 1, 8, 1>}, {transform_indices = @transform_11, window_bounds = array<i64: 1, 8, 8>}, {transform_indices = @transform_12, window_bounds = array<i64: 1, 8, 8>}, {transform_indices = @transform_13, window_bounds = array<i64: 1, 8, 8>}, {transform_indices = @transform_14, window_bounds = array<i64: 1, 8, 8>}, {pipeline_mode = #tpu.pipeline_mode<synchronous>, transform_indices = @transform_15, window_bounds = array<i64: 1, 128>}, {transform_indices = @transform_16, window_bounds = array<i64: 1, 8, 1>}]} {
    %c0 = arith.constant 0 : index
    %c0_0 = arith.constant 0 : index
    %c0_1 = arith.constant 0 : index
    %0 = vector.load %arg1[%c0, %c0_0, %c0_1] : memref<1x8x128xbf16, #tpu.memory_space<vmem>>, vector<1x8x128xbf16>
    %1 = vector.shape_cast %0 : vector<1x8x128xbf16> to vector<8x128xbf16>
    %c0_2 = arith.constant 0 : index
    %c0_3 = arith.constant 0 : index
    %c0_4 = arith.constant 0 : index
    %2 = vector.load %arg2[%c0_2, %c0_3, %c0_4] : memref<1x8x128xbf16, #tpu.memory_space<vmem>>, vector<1x8x128xbf16>
    %3 = vector.shape_cast %2 : vector<1x8x128xbf16> to vector<8x128xbf16>
    %c0_5 = arith.constant 0 : index
    %c0_6 = arith.constant 0 : index
    %4 = vector.load %arg3[%c0_5, %c0_6] : memref<7x128xbf16, #tpu.memory_space<vmem>>, vector<7x128xbf16>
    %c0_7 = arith.constant 0 : index
    %c0_8 = arith.constant 0 : index
    %c0_9 = arith.constant 0 : index
    %5 = vector.load %arg4[%c0_7, %c0_8, %c0_9] : memref<1x8x128xbf16, #tpu.memory_space<vmem>>, vector<1x8x128xbf16>
    %6 = vector.shape_cast %5 : vector<1x8x128xbf16> to vector<8x128xbf16>
    %c0_10 = arith.constant 0 : index
    %c0_11 = arith.constant 0 : index
    %c0_12 = arith.constant 0 : index
    %7 = vector.load %arg5[%c0_10, %c0_11, %c0_12] : memref<1x1x128xf32, #tpu.memory_space<vmem>>, vector<1x1x128xf32>
    %8 = vector.shape_cast %7 : vector<1x1x128xf32> to vector<1x128xf32>
    %c0_13 = arith.constant 0 : index
    %c0_14 = arith.constant 0 : index
    %c0_15 = arith.constant 0 : index
    %9 = vector.load %arg6[%c0_13, %c0_14, %c0_15] : memref<1x1x128xf32, #tpu.memory_space<vmem>>, vector<1x1x128xf32>
    %10 = vector.shape_cast %9 : vector<1x1x128xf32> to vector<1x128xf32>
    %c0_16 = arith.constant 0 : index
    %c0_17 = arith.constant 0 : index
    %c0_18 = arith.constant 0 : index
    %11 = vector.load %arg7[%c0_16, %c0_17, %c0_18] : memref<1x1x8xf32, #tpu.memory_space<vmem>>, vector<1x1x8xf32>
    %12 = vector.shape_cast %11 : vector<1x1x8xf32> to vector<1x8xf32>
    %c0_19 = arith.constant 0 : index
    %c0_20 = arith.constant 0 : index
    %c0_21 = arith.constant 0 : index
    %13 = vector.load %arg8[%c0_19, %c0_20, %c0_21] : memref<1x8x1xf32, #tpu.memory_space<vmem>>, vector<1x8x1xf32>
    %14 = vector.shape_cast %13 : vector<1x8x1xf32> to vector<8x1xf32>
    %c0_22 = arith.constant 0 : index
    %c0_23 = arith.constant 0 : index
    %c0_24 = arith.constant 0 : index
    %15 = vector.load %arg9[%c0_22, %c0_23, %c0_24] : memref<1x8x1xf32, #tpu.memory_space<vmem>>, vector<1x8x1xf32>
    %16 = vector.shape_cast %15 : vector<1x8x1xf32> to vector<8x1xf32>
    %c0_25 = arith.constant 0 : index
    %c0_26 = arith.constant 0 : index
    %c0_27 = arith.constant 0 : index
    %17 = vector.load %arg10[%c0_25, %c0_26, %c0_27] : memref<1x8x1xf32, #tpu.memory_space<vmem>>, vector<1x8x1xf32>
    %18 = vector.shape_cast %17 : vector<1x8x1xf32> to vector<8x1xf32>
    %c0_28 = arith.constant 0 : index
    %c0_29 = arith.constant 0 : index
    %c0_30 = arith.constant 0 : index
    %19 = vector.load %arg11[%c0_28, %c0_29, %c0_30] : memref<1x8x1xf32, #tpu.memory_space<vmem>>, vector<1x8x1xf32>
    %20 = vector.shape_cast %19 : vector<1x8x1xf32> to vector<8x1xf32>
    %c0_31 = arith.constant 0 : index
    %c0_32 = arith.constant 0 : index
    %c0_33 = arith.constant 0 : index
    %21 = vector.load %arg12[%c0_31, %c0_32, %c0_33] : memref<1x8x8xbf16, #tpu.memory_space<vmem>>, vector<1x8x8xbf16>
    %22 = vector.shape_cast %21 : vector<1x8x8xbf16> to vector<8x8xbf16>
    %c0_34 = arith.constant 0 : index
    %c0_35 = arith.constant 0 : index
    %c0_36 = arith.constant 0 : index
    %23 = vector.load %arg13[%c0_34, %c0_35, %c0_36] : memref<1x8x8xbf16, #tpu.memory_space<vmem>>, vector<1x8x8xbf16>
    %24 = vector.shape_cast %23 : vector<1x8x8xbf16> to vector<8x8xbf16>
    %c0_37 = arith.constant 0 : index
    %c0_38 = arith.constant 0 : index
    %c0_39 = arith.constant 0 : index
    %25 = vector.load %arg14[%c0_37, %c0_38, %c0_39] : memref<1x8x8xbf16, #tpu.memory_space<vmem>>, vector<1x8x8xbf16>
    %26 = vector.shape_cast %25 : vector<1x8x8xbf16> to vector<8x8xbf16>
    %c0_40 = arith.constant 0 : index
    %c0_41 = arith.constant 0 : index
    %c0_42 = arith.constant 0 : index
    %27 = vector.load %arg15[%c0_40, %c0_41, %c0_42] : memref<1x8x8xbf16, #tpu.memory_space<vmem>>, vector<1x8x8xbf16>
    %28 = vector.shape_cast %27 : vector<1x8x8xbf16> to vector<8x8xbf16>
    %c0_43 = arith.constant 0 : index
    %c0_44 = arith.constant 0 : index
    %29 = vector.load %arg16[%c0_43, %c0_44] : memref<1x128xf32, #tpu.memory_space<vmem>>, vector<1x128xf32>
    %cst = arith.constant 1.000000e+00 : f32
    %30 = vector.broadcast %cst : f32 to vector<1x128xf32>
    %cst_45 = arith.constant 1.000000e+00 : f32
    %31 = vector.broadcast %cst_45 : f32 to vector<1x8xf32>
    %32 = arith.subf %31, %12 : vector<1x8xf32>
    %cst_46 = arith.constant -1.000000e+10 : f32
    %33 = vector.broadcast %cst_46 : f32 to vector<1x8xf32>
    %34 = arith.mulf %33, %32 : vector<1x8xf32>
    %35 = arith.extf %6 : vector<8x128xbf16> to vector<8x128xf32>
    %cst_47 = arith.constant 0.000000e+00 : f32
    %36 = vector.broadcast %cst_47 : f32 to vector<8x1xf32>
    %37 = arith.truncf %35 : vector<8x128xf32> to vector<8x128xbf16>
    %38 = arith.addf %8, %10 : vector<1x128xf32>
    %39 = arith.truncf %38 : vector<1x128xf32> to vector<1x128xbf16>
    %cst_48 = arith.constant dense<0.000000e+00> : vector<1x7xf32>
    %40 = tpu.matmul %39, %4, %cst_48 {dimension_numbers = #tpu.dot_dimension_numbers<[1], [1], [0], [0], [0, 0, 1, 0], [], []>} : vector<1x128xbf16>, vector<7x128xbf16>, vector<1x7xf32> -> vector<1x7xf32>
    %cst_49 = arith.constant 0.176776692 : f32
    %41 = vector.broadcast %cst_49 : f32 to vector<1x7xf32>
    %42 = arith.mulf %40, %41 : vector<1x7xf32>
    %cst_50 = arith.constant dense<0xFF800000> : vector<1xf32>
    %43 = vector.multi_reduction <maximumf>, %42, %cst_50 [1] : vector<1x7xf32> to vector<1xf32>
    %44 = vector.shape_cast %43 : vector<1xf32> to vector<1x1xf32>
    %45 = vector.broadcast %44 : vector<1x1xf32> to vector<1x7xf32>
    %46 = arith.subf %42, %45 : vector<1x7xf32>
    %47 = math.exp %46 : vector<1x7xf32>
    %cst_51 = arith.constant dense<0.000000e+00> : vector<1xf32>
    %48 = vector.multi_reduction <add>, %47, %cst_51 [1] : vector<1x7xf32> to vector<1xf32>
    %49 = vector.shape_cast %48 : vector<1xf32> to vector<1x1xf32>
    %50 = tpu.reciprocal %49 {approx = true} : vector<1x1xf32> -> vector<1x1xf32>
    %51 = vector.broadcast %50 : vector<1x1xf32> to vector<1x7xf32>
    %52 = arith.mulf %47, %51 : vector<1x7xf32>
    %53 = arith.truncf %52 : vector<1x7xf32> to vector<1x7xbf16>
    %cst_52 = arith.constant dense<0.000000e+00> : vector<1x128xf32>
    %54 = tpu.matmul %53, %4, %cst_52 {dimension_numbers = #tpu.dot_dimension_numbers<[1], [0], [0], [1], [0, 0, 1, 1], [], []>} : vector<1x7xbf16>, vector<7x128xbf16>, vector<1x128xf32> -> vector<1x128xf32>
    %55 = arith.addf %10, %54 : vector<1x128xf32>
    %56 = arith.subf %8, %54 : vector<1x128xf32>
    %57 = tpu.concatenate %18, %36 in 1 : vector<8x1xf32>, vector<8x1xf32> -> vector<8x2xf32>
    %58 = arith.truncf %57 : vector<8x2xf32> to vector<8x2xbf16>
    %cst_53 = arith.constant dense<0.000000e+00> : vector<8x2xf32>
    %59 = tpu.matmul %22, %58, %cst_53 {dimension_numbers = #tpu.dot_dimension_numbers<[1], [0], [0], [1], [0, 0, 1, 1], [], []>} : vector<8x8xbf16>, vector<8x2xbf16>, vector<8x2xf32> -> vector<8x2xf32>
    %60 = vector.extract_strided_slice %59 {offsets = [0, 0], sizes = [8, 1], strides = [1, 1]} : vector<8x2xf32> to vector<8x1xf32>
    %61 = arith.addf %60, %18 : vector<8x1xf32>
    %cst_54 = arith.constant 0.000000e+00 : f32
    %62 = vector.broadcast %cst_54 : f32 to vector<8x1xf32>
    %63 = arith.cmpf ogt, %61, %62 : vector<8x1xf32>
    %cst_55 = arith.constant 1.000000e+00 : f32
    %64 = vector.broadcast %cst_55 : f32 to vector<8x1xf32>
    %65 = arith.select %63, %64, %61 : vector<8x1xi1>, vector<8x1xf32>
    %66 = arith.subf %65, %18 : vector<8x1xf32>
    %67 = vector.extract_strided_slice %59 {offsets = [0, 1], sizes = [8, 1], strides = [1, 1]} : vector<8x2xf32> to vector<8x1xf32>
    %68 = arith.mulf %67, %20 : vector<8x1xf32>
    %69 = arith.truncf %18 : vector<8x1xf32> to vector<8x1xbf16>
    %cst_56 = arith.constant dense<0.000000e+00> : vector<8x1xf32>
    %70 = tpu.matmul %24, %69, %cst_56 {dimension_numbers = #tpu.dot_dimension_numbers<[1], [0], [0], [1], [0, 0, 1, 1], [], []>} : vector<8x8xbf16>, vector<8x1xbf16>, vector<8x1xf32> -> vector<8x1xf32>
    %71 = arith.truncf %66 : vector<8x1xf32> to vector<8x1xbf16>
    %cst_57 = arith.constant dense<0.000000e+00> : vector<8x1xf32>
    %72 = tpu.matmul %26, %71, %cst_57 {dimension_numbers = #tpu.dot_dimension_numbers<[1], [0], [0], [1], [0, 0, 1, 1], [], []>} : vector<8x8xbf16>, vector<8x1xbf16>, vector<8x1xf32> -> vector<8x1xf32>
    %73 = arith.mulf %16, %70 : vector<8x1xf32>
    %74 = arith.mulf %73, %72 : vector<8x1xf32>
    %cst_58 = arith.constant dense<0.000000e+00> : vector<8x8xf32>
    %75 = tpu.matmul %3, %37, %cst_58 {dimension_numbers = #tpu.dot_dimension_numbers<[1], [1], [0], [0], [0, 0, 1, 0], [], []>} : vector<8x128xbf16>, vector<8x128xbf16>, vector<8x8xf32> -> vector<8x8xf32>
    %76 = vector.broadcast %12 : vector<1x8xf32> to vector<8x8xf32>
    %77 = arith.mulf %75, %76 : vector<8x8xf32>
    %78 = vector.broadcast %74 : vector<8x1xf32> to vector<8x8xf32>
    %79 = arith.mulf %77, %78 : vector<8x8xf32>
    %cst_59 = arith.constant 1.000000e+00 : f32
    %80 = vector.broadcast %cst_59 : f32 to vector<8x1xf32>
    %81 = arith.subf %80, %74 : vector<8x1xf32>
    %cst_60 = arith.constant -1.000000e+10 : f32
    %82 = vector.broadcast %cst_60 : f32 to vector<8x1xf32>
    %83 = arith.mulf %82, %81 : vector<8x1xf32>
    %84 = vector.broadcast %83 : vector<8x1xf32> to vector<8x8xf32>
    %85 = arith.addf %79, %84 : vector<8x8xf32>
    %86 = vector.broadcast %34 : vector<1x8xf32> to vector<8x8xf32>
    %87 = arith.addf %85, %86 : vector<8x8xf32>
    %cst_61 = arith.constant 0.176776692 : f32
    %88 = vector.broadcast %cst_61 : f32 to vector<8x8xf32>
    %89 = arith.mulf %87, %88 : vector<8x8xf32>
    %cst_62 = arith.constant dense<0xFF800000> : vector<8xf32>
    %90 = vector.multi_reduction <maximumf>, %89, %cst_62 [1] : vector<8x8xf32> to vector<8xf32>
    %91 = vector.shape_cast %90 : vector<8xf32> to vector<8x1xf32>
    %92 = vector.broadcast %91 : vector<8x1xf32> to vector<8x8xf32>
    %93 = arith.subf %89, %92 : vector<8x8xf32>
    %94 = math.exp %93 : vector<8x8xf32>
    %cst_63 = arith.constant dense<0.000000e+00> : vector<8xf32>
    %95 = vector.multi_reduction <add>, %94, %cst_63 [1] : vector<8x8xf32> to vector<8xf32>
    %96 = vector.shape_cast %95 : vector<8xf32> to vector<8x1xf32>
    %97 = tpu.reciprocal %96 {approx = true} : vector<8x1xf32> -> vector<8x1xf32>
    %98 = vector.broadcast %97 : vector<8x1xf32> to vector<8x8xf32>
    %99 = arith.mulf %94, %98 : vector<8x8xf32>
    %100 = arith.mulf %99, %75 : vector<8x8xf32>
    %cst_64 = arith.constant dense<0.000000e+00> : vector<8xf32>
    %101 = vector.multi_reduction <add>, %100, %cst_64 [1] : vector<8x8xf32> to vector<8xf32>
    %102 = vector.shape_cast %101 : vector<8xf32> to vector<8x1xf32>
    %103 = arith.mulf %102, %74 : vector<8x1xf32>
    %104 = arith.truncf %103 : vector<8x1xf32> to vector<8x1xbf16>
    %cst_65 = arith.constant dense<0.000000e+00> : vector<8x1xf32>
    %105 = tpu.matmul %28, %104, %cst_65 {dimension_numbers = #tpu.dot_dimension_numbers<[1], [0], [0], [1], [0, 0, 1, 1], [], []>} : vector<8x8xbf16>, vector<8x1xbf16>, vector<8x1xf32> -> vector<8x1xf32>
    %cst_66 = arith.constant dense<0.000000e+00> : vector<128xf32>
    %106 = vector.multi_reduction <add>, %35, %cst_66 [0] : vector<8x128xf32> to vector<128xf32>
    %107 = vector.shape_cast %106 : vector<128xf32> to vector<1x128xf32>
    %108 = tpu.concatenate %107, %55 in 0 : vector<1x128xf32>, vector<1x128xf32> -> vector<2x128xf32>
    %109 = arith.truncf %108 : vector<2x128xf32> to vector<2x128xbf16>
    %cst_67 = arith.constant dense<0.000000e+00> : vector<8x2xf32>
    %110 = tpu.matmul %1, %109, %cst_67 {dimension_numbers = #tpu.dot_dimension_numbers<[1], [1], [0], [0], [0, 0, 1, 0], [], []>} : vector<8x128xbf16>, vector<2x128xbf16>, vector<8x2xf32> -> vector<8x2xf32>
    %111 = vector.extract_strided_slice %110 {offsets = [0, 0], sizes = [8, 1], strides = [1, 1]} : vector<8x2xf32> to vector<8x1xf32>
    %112 = arith.mulf %111, %14 : vector<8x1xf32>
    %113 = vector.extract_strided_slice %110 {offsets = [0, 1], sizes = [8, 1], strides = [1, 1]} : vector<8x2xf32> to vector<8x1xf32>
    %114 = arith.addf %105, %68 : vector<8x1xf32>
    %cst_68 = arith.constant 1.000000e+00 : f32
    %115 = vector.broadcast %cst_68 : f32 to vector<8x1xf32>
    %116 = arith.mulf %114, %115 : vector<8x1xf32>
    %117 = arith.addf %116, %112 : vector<8x1xf32>
    %118 = arith.mulf %117, %66 : vector<8x1xf32>
    %119 = arith.addf %36, %118 : vector<8x1xf32>
    %120 = arith.addf %119, %113 : vector<8x1xf32>
    %cst_69 = arith.constant dense<0.000000e+00> : vector<8xf32>
    %121 = vector.multi_reduction <add>, %79, %cst_69 [0] : vector<8x8xf32> to vector<8xf32>
    %122 = vector.shape_cast %121 : vector<8xf32> to vector<1x8xf32>
    %123 = arith.negf %122 : vector<1x8xf32>
    %124 = math.exp %123 : vector<1x8xf32>
    %cst_70 = arith.constant 1.000000e+00 : f32
    %125 = vector.broadcast %cst_70 : f32 to vector<1x8xf32>
    %126 = arith.addf %125, %124 : vector<1x8xf32>
    %127 = arith.divf %125, %126 : vector<1x8xf32>
    %cst_71 = arith.constant 1.000000e+00 : f32
    %128 = vector.broadcast %cst_71 : f32 to vector<1x8xf32>
    %129 = arith.subf %128, %127 : vector<1x8xf32>
    %cst_72 = arith.constant 1.000000e+00 : f32
    %130 = vector.broadcast %cst_72 : f32 to vector<1x8xf32>
    %131 = arith.subf %130, %127 : vector<1x8xf32>
    %132 = arith.mulf %129, %131 : vector<1x8xf32>
    %cst_73 = arith.constant dense<0.000000e+00> : vector<8x128xf32>
    %133 = tpu.matmul %132, %30, %cst_73 {dimension_numbers = #tpu.dot_dimension_numbers<[0], [0], [1], [1], [0, 1, 1, 1], [], []>} : vector<1x8xf32>, vector<1x128xf32>, vector<8x128xf32> -> vector<8x128xf32>
    %134 = arith.mulf %133, %35 : vector<8x128xf32>
    %cst_74 = arith.constant dense<0.000000e+00> : vector<8x128xf32>
    %135 = tpu.matmul %127, %29, %cst_74 {dimension_numbers = #tpu.dot_dimension_numbers<[0], [0], [1], [1], [0, 1, 1, 1], [], []>} : vector<1x8xf32>, vector<1x128xf32>, vector<8x128xf32> -> vector<8x128xf32>
    %136 = arith.addf %134, %135 : vector<8x128xf32>
    %137 = arith.addf %18, %66 : vector<8x1xf32>
    %138 = arith.truncf %136 : vector<8x128xf32> to vector<8x128xbf16>
    %139 = arith.addf %56, %55 : vector<1x128xf32>
    %140 = arith.truncf %139 : vector<1x128xf32> to vector<1x128xbf16>
    %cst_75 = arith.constant dense<0.000000e+00> : vector<1x7xf32>
    %141 = tpu.matmul %140, %4, %cst_75 {dimension_numbers = #tpu.dot_dimension_numbers<[1], [1], [0], [0], [0, 0, 1, 0], [], []>} : vector<1x128xbf16>, vector<7x128xbf16>, vector<1x7xf32> -> vector<1x7xf32>
    %cst_76 = arith.constant 0.176776692 : f32
    %142 = vector.broadcast %cst_76 : f32 to vector<1x7xf32>
    %143 = arith.mulf %141, %142 : vector<1x7xf32>
    %cst_77 = arith.constant dense<0xFF800000> : vector<1xf32>
    %144 = vector.multi_reduction <maximumf>, %143, %cst_77 [1] : vector<1x7xf32> to vector<1xf32>
    %145 = vector.shape_cast %144 : vector<1xf32> to vector<1x1xf32>
    %146 = vector.broadcast %145 : vector<1x1xf32> to vector<1x7xf32>
    %147 = arith.subf %143, %146 : vector<1x7xf32>
    %148 = math.exp %147 : vector<1x7xf32>
    %cst_78 = arith.constant dense<0.000000e+00> : vector<1xf32>
    %149 = vector.multi_reduction <add>, %148, %cst_78 [1] : vector<1x7xf32> to vector<1xf32>
    %150 = vector.shape_cast %149 : vector<1xf32> to vector<1x1xf32>
    %151 = tpu.reciprocal %150 {approx = true} : vector<1x1xf32> -> vector<1x1xf32>
    %152 = vector.broadcast %151 : vector<1x1xf32> to vector<1x7xf32>
    %153 = arith.mulf %148, %152 : vector<1x7xf32>
    %154 = arith.truncf %153 : vector<1x7xf32> to vector<1x7xbf16>
    %cst_79 = arith.constant dense<0.000000e+00> : vector<1x128xf32>
    %155 = tpu.matmul %154, %4, %cst_79 {dimension_numbers = #tpu.dot_dimension_numbers<[1], [0], [0], [1], [0, 0, 1, 1], [], []>} : vector<1x7xbf16>, vector<7x128xbf16>, vector<1x128xf32> -> vector<1x128xf32>
    %156 = arith.addf %55, %155 : vector<1x128xf32>
    %157 = tpu.concatenate %66, %120 in 1 : vector<8x1xf32>, vector<8x1xf32> -> vector<8x2xf32>
    %158 = arith.truncf %157 : vector<8x2xf32> to vector<8x2xbf16>
    %cst_80 = arith.constant dense<0.000000e+00> : vector<8x2xf32>
    %159 = tpu.matmul %22, %158, %cst_80 {dimension_numbers = #tpu.dot_dimension_numbers<[1], [0], [0], [1], [0, 0, 1, 1], [], []>} : vector<8x8xbf16>, vector<8x2xbf16>, vector<8x2xf32> -> vector<8x2xf32>
    %160 = vector.extract_strided_slice %159 {offsets = [0, 0], sizes = [8, 1], strides = [1, 1]} : vector<8x2xf32> to vector<8x1xf32>
    %161 = arith.addf %160, %137 : vector<8x1xf32>
    %cst_81 = arith.constant 0.000000e+00 : f32
    %162 = vector.broadcast %cst_81 : f32 to vector<8x1xf32>
    %163 = arith.cmpf ogt, %161, %162 : vector<8x1xf32>
    %cst_82 = arith.constant 1.000000e+00 : f32
    %164 = vector.broadcast %cst_82 : f32 to vector<8x1xf32>
    %165 = arith.select %163, %164, %161 : vector<8x1xi1>, vector<8x1xf32>
    %166 = arith.subf %165, %137 : vector<8x1xf32>
    %167 = vector.extract_strided_slice %159 {offsets = [0, 1], sizes = [8, 1], strides = [1, 1]} : vector<8x2xf32> to vector<8x1xf32>
    %168 = arith.mulf %167, %20 : vector<8x1xf32>
    %169 = arith.truncf %66 : vector<8x1xf32> to vector<8x1xbf16>
    %cst_83 = arith.constant dense<0.000000e+00> : vector<8x1xf32>
    %170 = tpu.matmul %24, %169, %cst_83 {dimension_numbers = #tpu.dot_dimension_numbers<[1], [0], [0], [1], [0, 0, 1, 1], [], []>} : vector<8x8xbf16>, vector<8x1xbf16>, vector<8x1xf32> -> vector<8x1xf32>
    %171 = arith.truncf %166 : vector<8x1xf32> to vector<8x1xbf16>
    %cst_84 = arith.constant dense<0.000000e+00> : vector<8x1xf32>
    %172 = tpu.matmul %26, %171, %cst_84 {dimension_numbers = #tpu.dot_dimension_numbers<[1], [0], [0], [1], [0, 0, 1, 1], [], []>} : vector<8x8xbf16>, vector<8x1xbf16>, vector<8x1xf32> -> vector<8x1xf32>
    %173 = arith.mulf %16, %170 : vector<8x1xf32>
    %174 = arith.mulf %173, %172 : vector<8x1xf32>
    %cst_85 = arith.constant dense<0.000000e+00> : vector<8x8xf32>
    %175 = tpu.matmul %3, %138, %cst_85 {dimension_numbers = #tpu.dot_dimension_numbers<[1], [1], [0], [0], [0, 0, 1, 0], [], []>} : vector<8x128xbf16>, vector<8x128xbf16>, vector<8x8xf32> -> vector<8x8xf32>
    %176 = vector.broadcast %12 : vector<1x8xf32> to vector<8x8xf32>
    %177 = arith.mulf %175, %176 : vector<8x8xf32>
    %178 = vector.broadcast %174 : vector<8x1xf32> to vector<8x8xf32>
    %179 = arith.mulf %177, %178 : vector<8x8xf32>
    %cst_86 = arith.constant 1.000000e+00 : f32
    %180 = vector.broadcast %cst_86 : f32 to vector<8x1xf32>
    %181 = arith.subf %180, %174 : vector<8x1xf32>
    %cst_87 = arith.constant -1.000000e+10 : f32
    %182 = vector.broadcast %cst_87 : f32 to vector<8x1xf32>
    %183 = arith.mulf %182, %181 : vector<8x1xf32>
    %184 = vector.broadcast %183 : vector<8x1xf32> to vector<8x8xf32>
    %185 = arith.addf %179, %184 : vector<8x8xf32>
    %186 = vector.broadcast %34 : vector<1x8xf32> to vector<8x8xf32>
    %187 = arith.addf %185, %186 : vector<8x8xf32>
    %cst_88 = arith.constant 0.176776692 : f32
    %188 = vector.broadcast %cst_88 : f32 to vector<8x8xf32>
    %189 = arith.mulf %187, %188 : vector<8x8xf32>
    %cst_89 = arith.constant dense<0xFF800000> : vector<8xf32>
    %190 = vector.multi_reduction <maximumf>, %189, %cst_89 [1] : vector<8x8xf32> to vector<8xf32>
    %191 = vector.shape_cast %190 : vector<8xf32> to vector<8x1xf32>
    %192 = vector.broadcast %191 : vector<8x1xf32> to vector<8x8xf32>
    %193 = arith.subf %189, %192 : vector<8x8xf32>
    %194 = math.exp %193 : vector<8x8xf32>
    %cst_90 = arith.constant dense<0.000000e+00> : vector<8xf32>
    %195 = vector.multi_reduction <add>, %194, %cst_90 [1] : vector<8x8xf32> to vector<8xf32>
    %196 = vector.shape_cast %195 : vector<8xf32> to vector<8x1xf32>
    %197 = tpu.reciprocal %196 {approx = true} : vector<8x1xf32> -> vector<8x1xf32>
    %198 = vector.broadcast %197 : vector<8x1xf32> to vector<8x8xf32>
    %199 = arith.mulf %194, %198 : vector<8x8xf32>
    %200 = arith.mulf %199, %175 : vector<8x8xf32>
    %cst_91 = arith.constant dense<0.000000e+00> : vector<8xf32>
    %201 = vector.multi_reduction <add>, %200, %cst_91 [1] : vector<8x8xf32> to vector<8xf32>
    %202 = vector.shape_cast %201 : vector<8xf32> to vector<8x1xf32>
    %203 = arith.mulf %202, %174 : vector<8x1xf32>
    %204 = arith.truncf %203 : vector<8x1xf32> to vector<8x1xbf16>
    %cst_92 = arith.constant dense<0.000000e+00> : vector<8x1xf32>
    %205 = tpu.matmul %28, %204, %cst_92 {dimension_numbers = #tpu.dot_dimension_numbers<[1], [0], [0], [1], [0, 0, 1, 1], [], []>} : vector<8x8xbf16>, vector<8x1xbf16>, vector<8x1xf32> -> vector<8x1xf32>
    %cst_93 = arith.constant dense<0.000000e+00> : vector<128xf32>
    %206 = vector.multi_reduction <add>, %136, %cst_93 [0] : vector<8x128xf32> to vector<128xf32>
    %207 = vector.shape_cast %206 : vector<128xf32> to vector<1x128xf32>
    %208 = tpu.concatenate %207, %156 in 0 : vector<1x128xf32>, vector<1x128xf32> -> vector<2x128xf32>
    %209 = arith.truncf %208 : vector<2x128xf32> to vector<2x128xbf16>
    %cst_94 = arith.constant dense<0.000000e+00> : vector<8x2xf32>
    %210 = tpu.matmul %1, %209, %cst_94 {dimension_numbers = #tpu.dot_dimension_numbers<[1], [1], [0], [0], [0, 0, 1, 0], [], []>} : vector<8x128xbf16>, vector<2x128xbf16>, vector<8x2xf32> -> vector<8x2xf32>
    %211 = vector.extract_strided_slice %210 {offsets = [0, 0], sizes = [8, 1], strides = [1, 1]} : vector<8x2xf32> to vector<8x1xf32>
    %212 = arith.mulf %211, %14 : vector<8x1xf32>
    %213 = vector.extract_strided_slice %210 {offsets = [0, 1], sizes = [8, 1], strides = [1, 1]} : vector<8x2xf32> to vector<8x1xf32>
    %214 = arith.addf %205, %168 : vector<8x1xf32>
    %cst_95 = arith.constant 5.000000e-01 : f32
    %215 = vector.broadcast %cst_95 : f32 to vector<8x1xf32>
    %216 = arith.mulf %214, %215 : vector<8x1xf32>
    %217 = arith.addf %216, %212 : vector<8x1xf32>
    %218 = arith.mulf %217, %166 : vector<8x1xf32>
    %219 = arith.addf %120, %218 : vector<8x1xf32>
    %220 = arith.addf %219, %213 : vector<8x1xf32>
    %c0_96 = arith.constant 0 : index
    %c0_97 = arith.constant 0 : index
    %c0_98 = arith.constant 0 : index
    %221 = vector.load %arg17[%c0_96, %c0_97, %c0_98] : memref<1x8x1xf32, #tpu.memory_space<vmem>>, vector<1x8x1xf32>
    %222 = vector.shape_cast %221 : vector<1x8x1xf32> to vector<8x1xf32>
    %223 = vector.shape_cast %220 : vector<8x1xf32> to vector<1x8x1xf32>
    tpu.vector_store %arg17[%c0_96, %c0_97, %c0_98], %223 {strides = array<i32>} : memref<1x8x1xf32, #tpu.memory_space<vmem>>, vector<1x8x1xf32>,
    return
  }
  func.func @transform_0(%arg0: i32) -> (i32, i32, i32) {
    %c0_i32 = arith.constant 0 : i32
    %c0_i32_0 = arith.constant 0 : i32
    %c0_i32_1 = arith.constant 0 : i32
    return %arg0, %c0_i32, %c0_i32_0 : i32, i32, i32
  }
  func.func @transform_1(%arg0: i32) -> (i32, i32, i32) {
    %c0_i32 = arith.constant 0 : i32
    %c0_i32_0 = arith.constant 0 : i32
    %c0_i32_1 = arith.constant 0 : i32
    return %arg0, %c0_i32, %c0_i32_0 : i32, i32, i32
  }
  func.func @transform_2(%arg0: i32) -> (i32, i32) {
    %c0_i32 = arith.constant 0 : i32
    %c0_i32_0 = arith.constant 0 : i32
    %c0_i32_1 = arith.constant 0 : i32
    return %c0_i32, %c0_i32_0 : i32, i32
  }
  func.func @transform_3(%arg0: i32) -> (i32, i32, i32) {
    %c0_i32 = arith.constant 0 : i32
    %c0_i32_0 = arith.constant 0 : i32
    %c0_i32_1 = arith.constant 0 : i32
    return %arg0, %c0_i32, %c0_i32_0 : i32, i32, i32
  }
  func.func @transform_4(%arg0: i32) -> (i32, i32, i32) {
    %c0_i32 = arith.constant 0 : i32
    %c0_i32_0 = arith.constant 0 : i32
    %c0_i32_1 = arith.constant 0 : i32
    return %arg0, %c0_i32, %c0_i32_0 : i32, i32, i32
  }
  func.func @transform_5(%arg0: i32) -> (i32, i32, i32) {
    %c0_i32 = arith.constant 0 : i32
    %c0_i32_0 = arith.constant 0 : i32
    %c0_i32_1 = arith.constant 0 : i32
    return %arg0, %c0_i32, %c0_i32_0 : i32, i32, i32
  }
  func.func @transform_6(%arg0: i32) -> (i32, i32, i32) {
    %c0_i32 = arith.constant 0 : i32
    %c0_i32_0 = arith.constant 0 : i32
    %c0_i32_1 = arith.constant 0 : i32
    return %arg0, %c0_i32, %c0_i32_0 : i32, i32, i32
  }
  func.func @transform_7(%arg0: i32) -> (i32, i32, i32) {
    %c0_i32 = arith.constant 0 : i32
    %c0_i32_0 = arith.constant 0 : i32
    %c0_i32_1 = arith.constant 0 : i32
    return %arg0, %c0_i32, %c0_i32_0 : i32, i32, i32
  }
  func.func @transform_8(%arg0: i32) -> (i32, i32, i32) {
    %c0_i32 = arith.constant 0 : i32
    %c0_i32_0 = arith.constant 0 : i32
    %c0_i32_1 = arith.constant 0 : i32
    return %arg0, %c0_i32, %c0_i32_0 : i32, i32, i32
  }
  func.func @transform_9(%arg0: i32) -> (i32, i32, i32) {
    %c0_i32 = arith.constant 0 : i32
    %c0_i32_0 = arith.constant 0 : i32
    %c0_i32_1 = arith.constant 0 : i32
    return %arg0, %c0_i32, %c0_i32_0 : i32, i32, i32
  }
  func.func @transform_10(%arg0: i32) -> (i32, i32, i32) {
    %c0_i32 = arith.constant 0 : i32
    %c0_i32_0 = arith.constant 0 : i32
    %c0_i32_1 = arith.constant 0 : i32
    return %arg0, %c0_i32, %c0_i32_0 : i32, i32, i32
  }
  func.func @transform_11(%arg0: i32) -> (i32, i32, i32) {
    %c0_i32 = arith.constant 0 : i32
    %c0_i32_0 = arith.constant 0 : i32
    %c0_i32_1 = arith.constant 0 : i32
    return %arg0, %c0_i32, %c0_i32_0 : i32, i32, i32
  }
  func.func @transform_12(%arg0: i32) -> (i32, i32, i32) {
    %c0_i32 = arith.constant 0 : i32
    %c0_i32_0 = arith.constant 0 : i32
    %c0_i32_1 = arith.constant 0 : i32
    return %arg0, %c0_i32, %c0_i32_0 : i32, i32, i32
  }
  func.func @transform_13(%arg0: i32) -> (i32, i32, i32) {
    %c0_i32 = arith.constant 0 : i32
    %c0_i32_0 = arith.constant 0 : i32
    %c0_i32_1 = arith.constant 0 : i32
    return %arg0, %c0_i32, %c0_i32_0 : i32, i32, i32
  }
  func.func @transform_14(%arg0: i32) -> (i32, i32, i32) {
    %c0_i32 = arith.constant 0 : i32
    %c0_i32_0 = arith.constant 0 : i32
    %c0_i32_1 = arith.constant 0 : i32
    return %arg0, %c0_i32, %c0_i32_0 : i32, i32, i32
  }
  func.func @transform_15(%arg0: i32) -> (i32, i32) {
    %c0_i32 = arith.constant 0 : i32
    %c0_i32_0 = arith.constant 0 : i32
    %c0_i32_1 = arith.constant 0 : i32
    return %c0_i32, %c0_i32_0 : i32, i32
  }
  func.func @transform_16(%arg0: i32) -> (i32, i32, i32) {
    %c0_i32 = arith.constant 0 : i32
    %c0_i32_0 = arith.constant 0 : i32
    %c0_i32_1 = arith.constant 0 : i32
    return %arg0, %c0_i32, %c0_i32_0 : i32, i32, i32
  }
}

</mosaic_0001>

<bundles_post_ra>
// kernel: tpu_custom_call.1
= control target key start
LH: loop header
LB: loop body
LE: loop exit
PB: predicated region body
PF: predicated region fallthrough
CT: control target
= control target key end

     0   :  { %s2386_s21 = smov 0   ;;  %s2698_s0 = inlined_call_operand.vmem [shape: bf16[2,8,128], index: 0, kind: input, shape index: {}]   ;;  %s2699_s1 = inlined_call_operand.vmem [shape: bf16[2,8,128], index: 1, kind: input, shape index: {}]   ;;  %s2700_s2 = inlined_call_operand.vmem [shape: bf16[7,128], index: 2, kind: input, shape index: {}]   ;;  %s2701_s3 = inlined_call_operand.vmem [shape: bf16[2,8,128], index: 3, kind: input, shape index: {}]   ;;  %s2702_s4 = inlined_call_operand.vmem [shape: f32[2,1,128], index: 4, kind: input, shape index: {}]   ;;  %s2703_s5 = inlined_call_operand.vmem [shape: f32[2,1,128], index: 5, kind: input, shape index: {}]   ;;  %s2704_s6 = inlined_call_operand.vmem [shape: f32[2,1,8], index: 6, kind: input, shape index: {}]   ;;  %s2705_s7 = inlined_call_operand.vmem [shape: f32[2,8,1], index: 7, kind: input, shape index: {}]   ;;  %s2706_s8 = inlined_call_operand.vmem [shape: f32[2,8,1], index: 8, kind: input, shape index: {}]   ;;  %s2707_s9 = inlined_call_operand.vmem [shape: f32[2,8,1], index: 9, kind: input, shape index: {}]   ;;  %s2708_s10 = inlined_call_operand.vmem [shape: f32[2,8,1], index: 10, kind: input, shape index: {}]   ;;  %s2709_s11 = inlined_call_operand.vmem [shape: bf16[2,8,8], index: 11, kind: input, shape index: {}]   ;;  %s2710_s12 = inlined_call_operand.vmem [shape: bf16[2,8,8], index: 12, kind: input, shape index: {}]   ;;  %s2711_s13 = inlined_call_operand.vmem [shape: bf16[2,8,8], index: 13, kind: input, shape index: {}]   ;;  %s2712_s14 = inlined_call_operand.vmem [shape: bf16[2,8,8], index: 14, kind: input, shape index: {}]   ;;  %s2713_s15 = inlined_call_operand.vmem [shape: f32[1,128], index: 15, kind: input, shape index: {}]   ;;  %s2714_s16 = inlined_call_operand.vmem [shape: f32[2,8,1], index: 16, kind: output, shape index: {}]  }
   0x1   :  { %2715 = sst [smem:[#allocation2_spill]] %s2698_s0 }
   0x2 LB: > { %s2073_s22 = sadd.s32 4294967295, %s2292_s21   ;;  %p2077_p0 = scmp.ge.s32.totalorder %s2292_s21, 1  ;;  %s2292_s21 = sphi %s2386_s21, %s26_s21  }
   0x3   : > { %p575_p1 = scmp.lt.s32.totalorder %s2292_s21, 3 }
   0x5   : > { %p576_p2 = pnand %p2077_p0, %p575_p1 }
   0x6   : > { %p672_p3 = scmp.lt.s32.totalorder (!%p576_p2), %s2073_s22, 1 }
   0x7   : > { %579 = sbr.rel (%p576_p2) target bundleno = 3057 (0xbf1), region = 84 }
   0xc   : > { %v2397_v0 = vld [vmem:[%s2700_s2] sm:$0xf]  ;;  %v2294_v1 = vmov 0.0   ;;  %vm2295_vm0 = vmmov 0   ;;  %s2718_s22 = smov (!%p672_p3, %s2073_s22), 1  ;;  %vm792_vm1 = vcmask 49152   ;;  %v1054_v39 = vlaneseq }
   0xd   : > { %2143 = vmatprep.subr.bf16.mxu0 %v2294_v1  ;;  %2145 = vmatprep.mubr.msk.bf16.mxu0 %vm2295_vm0, %v2294_v1  ;;  %s686_s27 = scalar_lea.vmem %s2702_s4, %s2718_s22  ;;  %s689_s30 = scalar_lea.vmem %s2703_s5, %s2718_s22  ;;  %vm809_vm2 = vcmask 1042432   ;;  %vm810_vm3 = vcmask 1043456   ;;  %v2296_v17 = vmov 65535   ;;  %vm858_vm4 = vcmask 7168  }
   0xe   : > { %2144 = vmatpush3.bf16.xpose.msra.mxu0 %v2397_v0  ;;  %2149 = vmatprep.subr.bf16.mxu1 %v2294_v1  ;;  %v2417_v2 = vld [vmem:[%s686_s27] sm:$0x1]  ;;  %v811_v18 = vsel %vm809_vm2, 4294967295, %v2296_v17  ;;  %s2434_s0 = sshll.u32 %s2718_s22, 3  ;;  %vm805_vm5 = vcmask 56320   ;;  %s2446_s20 = sshll.u32 %s2718_s22, 2 }
   0xf   : > { %2151 = vmatprep.mubr.msk.bf16.mxu1 %vm2295_vm0, %v2294_v1  ;;  %2161 = vmatprep.subr.bf16.mxu0 %v2294_v1  ;;  %v2419_v3 = vld [vmem:[%s689_s30] sm:$0x1]  ;;  %v812_v19 = vsel %vm810_vm3, %v811_v18, 0  ;;  %s704_s19 = scalar_lea.vmem %s2707_s9, %s2434_s0  ;;  %s712_s25 = scalar_lea.vmem %s2709_s11, %s2446_s20  ;;  %vm861_vm6 = vcmask 64512   ;;  %v1055_v43 = vshrl.u32 %v1054_v39, 7  ;;  %vm1111_vm8 = vcmask 1040384  }
  0x10   : > { %v749_v4 = vadd.f32 %v2419_v3, %v2417_v2  ;;  %v2429_v20 = vand.u32 %v812_v19, %v2397_v0  ;;  %v2440_v22 = vld [vmem:[%s704_s19] sm:$0xff]  ;;  %s683_s28 = scalar_lea.vmem %s2701_s3, %s2446_s20  ;;  %s716_s17 = scalar_lea.vmem %s2710_s12, %s2446_s20 }
  0x11   : > { %v859_v23 = vsel %vm858_vm4, %v2440_v22, 0.0  ;;  %v2456_v29 = vld [vmem:[%s712_s25] sm:$0xf]  ;;  %v917_v30 = vpack.c.bf16 %v2440_v22, %v2440_v22  ;;  %s679_s23 = scalar_lea.vmem %s2699_s1, %s2446_s20  ;;  %v2502_v48 = vsub.s32 0, %v1055_v43  ;;  %s720_s26 = scalar_lea.vmem %s2711_s13, %s2446_s20 }
  0x12   : > { %v750_v5 = vpack.c.bf16 %v749_v4, %v749_v4  ;;  %2150 = vmatpush3.bf16.msra.mxu1 %v2429_v20  ;;  %v860_v24 = vpack.c.bf16 %v859_v23, %v859_v23  ;;  %v2474_v32 = vld [vmem:[%s716_s17] sm:$0xf]  ;;  %s700_s29 = scalar_lea.vmem %s2706_s8, %s2434_s0  ;;  %s692_s18 = scalar_lea.vmem %s2704_s6, %s2718_s22 }
  0x13   : > { %2155 = vmatprep.subr.bf16.mxu1 %v2294_v1  ;;  %v922_v31 = vsel %vm810_vm3, %v917_v30, 0  ;;  %v733_v33 = vld [vmem:[%s683_s28] sm:$0xf]  ;;  %s708_s27 = scalar_lea.vmem %s2708_s10, %s2434_s0  ;;  %s2299_s28 = smov 1  }
  0x14   : > { %v866_v28 = vsel %vm810_vm3, %v860_v24, 0  ;;  %v2485_v34 = vld [vmem:[%s679_s23] sm:$0xf]  ;;  %v2490_v35 = vunpack.c.l.bf16 %v733_v33  ;;  %s2716_s23 = sld [smem:[#allocation2_spill]]  ;;  %s724_s17 = scalar_lea.vmem %s2712_s14, %s2446_s20 }
  0x15   : > { %2146 = vmatmul.mubr.bf16.vlgmr.msra.gmra.mxu0 %v750_v5  ;;  %v2522_v61 = vld [vmem:[%s720_s26] sm:$0xf] }
  0x16   : > { %2163 = vmatprep.mubr.msk.bf16.mxu0 %vm2295_vm0, %v2294_v1  ;;  %2162 = vmatpush3.bf16.msra.mxu0 %v922_v31  ;;  %v1099_v36 = vrot.slane %v2490_v35, 4 }
  0x17   : > { %2173 = vmatprep.subr.bf16.mxu0 %v2294_v1 }
  0x18   : > { %v1100_v37 = vadd.f32 %v1099_v36, %v2490_v35 }
  0x1a   : > { %v1101_v40 = vrot.slane %v1100_v37, 2  ;;  %s675_s24 = scalar_lea.vmem %s2716_s23, %s2446_s20 }
  0x1c   : > { %v1102_v44 = vadd.f32 %v1101_v40, %v1100_v37 }
  0x1d   : > { %2164 = vmatmul.mubr.msk.bf16.vlgmr.msra.gmra.mxu0 %vm861_vm6, %v2474_v32 }
  0x1e   : > { %2174 = vmatpush3.bf16.xpose.msra.mxu0 %v733_v33  ;;  %2175 = vmatprep.mubr.msk.bf16.mxu0 %vm2295_vm0, %v2294_v1  ;;  %v1103_v50 = vrot.slane %v1102_v44, 1 }
  0x1f   : > { %2185 = vmatprep.subr.bf16.mxu0 %v2294_v1 }
  0x20   : > { %v1104_v56 = vadd.f32 %v1103_v50, %v1102_v44 }
  0x25   : > { %2176 = vmatmul.mubr.bf16.vlgmr.msra.gmra.mxu0 %v2485_v34 }
  0x26   : > { %2187 = vmatprep.mubr.msk.bf16.mxu0 %vm2295_vm0, %v2294_v1 }
  0xd5   : > { %v785_v6 = vpop.f32.mrf.mxu0 }
  0xd6   : > { %v791_v7 = vmul.f32 0.17677669, %v785_v6  ;;  %v2297_v6 = vmov 0  }
  0xd7   : > { %v2147_v8 = vpop.f32.mrf.mxu0  ;;  %2264 = vset.pattern.permute.xlu1 %v2297_v6 }
  0xd8   : > { %v793_v9 = vsel %vm792_vm1, %v791_v7, -inf }
  0xd9   : > { %794 = vmax.xlane.f32.xlu0 %v793_v9  ;;  %v788_v10 = vpop.f32.mrf.mxu0 }
  0xdb   : > { %v2148_v11 = vpop.f32.mrf.mxu0 }
  0xdc   : > { %v2536_v11 = vld [vmem:[%s700_s29] sm:$0xff] }
  0xdd   : > { %v958_v63 = vpop.f32.mrf.mxu0 }
 0x162   : > { %v795_v12 = vpop.xlane.xlu0 %794 }
 0x163   : > { %v796_v13 = vsub.f32 %v791_v7, %v795_v12  ;;  %v1011_v12 = vmul.f32 %v958_v63, %v2536_v11 }
 0x165   : > { %v797_v14 = vmul.f32 1.442695, %v796_v13 }
 0x167   : > { %2266 = vpow2.f32 %v797_v14 }
 0x174   : > { %v2267_v15 = vpop.eup %2266 }
 0x175   : > { %v799_v16 = vsel %vm792_vm1, %v2267_v15, 0.0 }
 0x176   : > { %800 = vadd.xlane.f32.xlu0 %v799_v16 }
 0x1ff   : > { %v801_v21 = vpop.xlane.xlu0 %800 }
 0x200   : > { %2268 = vrcp.f32 %v801_v21  ;;  %v736_v21 = vld [vmem:[%s692_s18] sm:$0x1]  ;;  %s2300_s18 = smov 127  }
 0x201   : > { %v2548_v23 = vrot.slane %v736_v21, %v2502_v48  ;;  %v746_v24 = vsub.f32 1.0, %v736_v21 }
 0x20d   : > { %v2269_v25 = vpop.eup %2268 }
 0x20e   : > { %v803_v26 = vmul.f32 %v2269_v25, %v2267_v15 }
 0x210   : > { %v804_v27 = vpack.c.bf16 %v803_v26, %v803_v26  ;;  %v747_v26 = vmul.f32 -1e+10, %v746_v24 }
 0x212   : > { %2152 = vmatmul.mubr.msk.bf16.vlgmr.msra.gmra.mxu1 %vm805_vm5, %v804_v27  ;;  %v2554_v31 = vrot.slane %v747_v26, %v2502_v48 }
 0x213   : > { %2156 = vmatpush3.bf16.msra.mxu1 %v866_v28  ;;  %2157 = vmatprep.mubr.msk.bf16.mxu1 %vm2295_vm0, %v2294_v1 }
 0x214   : > { %2167 = vmatprep.subr.bf16.mxu1 %v2294_v1 }
 0x21a   : > { %2158 = vmatmul.mubr.msk.bf16.vlgmr.msra.gmra.mxu1 %vm861_vm6, %v2456_v29 }
 0x21b   : > { %2169 = vmatprep.mubr.msk.bf16.mxu1 %vm2295_vm0, %v2294_v1 }
 0x2d2   : > { %v2494_v38 = vpop.f32.mrf.mxu1 }
 0x2d3   : > { %v2500_v47 = vadd.f32 %v2494_v38, %v2419_v3  ;;  %v2165_v3 = vpop.f32.mrf.mxu0 }
 0x2d4   : > { %v2153_v41 = vpop.f32.mrf.mxu1 }
 0x2d5   : > { %v1109_v54 = vrot.slane %v2500_v47, %v2502_v48  ;;  %v961_v4 = vpop.f32.mrf.mxu0 }
 0x2d6   : > { %v853_v42 = vpop.f32.mrf.mxu1 }
 0x2d7   : > { %v1112_v60 = vsel %vm1111_vm8, %v1104_v56, %v1109_v54  ;;  %v2166_v5 = vpop.f32.mrf.mxu0  ;;  %v2298_v54 = vmov 1.0  }
 0x2d8   : > { %v2154_v45 = vpop.f32.mrf.mxu1  ;;  %v1113_v62 = vpack.c.bf16 %v1112_v60, %v1112_v60  ;;  %v857_v5 = vsub.f32 %v2417_v2, %v2494_v38 }
 0x2d9   : > { %v2530_v7 = vpop.f32.mrf.mxu0 }
 0x2da   : > { %v2496_v46 = vpop.f32.mrf.mxu1  ;;  %v1059_v25 = vmul.f32 %v2548_v23, %v2530_v7 }
 0x2db   : > { %v908_v49 = vadd.f32 %v2496_v46, %v2440_v22  ;;  %v2177_v8 = vpop.f32.mrf.mxu0 }
 0x2dc   : > { %v2159_v51 = vpop.f32.mrf.mxu1 }
 0x2dd   : > { %vm909_vm7 = vcmp.gt.f32.partialorder %v908_v49, 0.0  ;;  %v1050_v9 = vpop.f32.mrf.mxu0 }
 0x2de   : > { %v910_v52 = vsel %vm909_vm7, 1.0, %v908_v49  ;;  %v905_v53 = vpop.f32.mrf.mxu1 }
 0x2df   : > { %v2509_v55 = vsub.f32 %v910_v52, %v2440_v22  ;;  %v2178_v10 = vpop.f32.mrf.mxu0  ;;  %v2562_v53 = vld [vmem:[%s675_s24] sm:$0xf]  ;;  %s696_s24 = scalar_lea.vmem %s2705_s7, %s2434_s0 }
 0x2e0   : > { %v2160_v57 = vpop.f32.mrf.mxu1 }
 0x2e1   : > { %v964_v58 = vpack.c.bf16 %v2509_v55, %v2509_v55 }
 0x2e3   : > { %v2518_v59 = vsel %vm810_vm3, %v964_v58, 0 }
 0x2e4   : > { %2168 = vmatpush3.bf16.msra.mxu1 %v2518_v59 }
 0x2e5   : > { %2179 = vmatprep.subr.bf16.mxu1 %v2294_v1 }
 0x2e7   : > { %2170 = vmatmul.mubr.msk.bf16.vlgmr.msra.gmra.mxu1 %vm861_vm6, %v2522_v61 }
 0x2e8   : > { %2180 = vmatpush3.bf16.xpose.msra.mxu1 %v1113_v62  ;;  %2181 = vmatprep.mubr.msk.bf16.mxu1 %vm2295_vm0, %v2294_v1 }
 0x2e9   : > { %2191 = vmatprep.subr.mxu1 %v2294_v1 }
 0x2ef   : > { %2182 = vmatmul.mubr.bf16.vlgmr.msra.gmra.mxu1 %v2562_v53 }
 0x2f0   : > { %2192 = vmatpush3.msk.msra.mxu1 %vm1111_vm8, %v2298_v54  ;;  %2193 = vmatprep.mubr.msk.f32.mxu1 %vm2295_vm0, %v2294_v1 }
 0x2f1   : > { %2201 = vmatprep.subr.bf16.mxu1 %v2294_v1 }
 0x3a7   : > { %v1005_v13 = vpop.f32.mrf.mxu1 }
 0x3a8   : > { %v2539_v14 = vmul.f32 %v1011_v12, %v1005_v13 }
 0x3a9   : > { %v2171_v15 = vpop.f32.mrf.mxu1 }
 0x3aa   : > { %1062 = vperm.xlu1 %2264, %v2539_v14   ;;  %v1066_v16 = vsub.f32 1.0, %v2539_v14 }
 0x3ab   : > { %v1008_v17 = vpop.f32.mrf.mxu1 }
 0x3ac   : > { %v1067_v18 = vmul.f32 -1e+10, %v1066_v16 }
 0x3ad   : > { %v2172_v19 = vpop.f32.mrf.mxu1 }
 0x3ae   : > { %1070 = vperm.xlu1 %2264, %v1067_v18  }
 0x425   : > { %v1063_v27 = vpop.permute.xlu1 %1062 }
 0x426   : > { %v1065_v28 = vmul.f32 %v1063_v27, %v1059_v25 }
 0x428   : > { %v1213_v30 = vsel %vm861_vm6, %v1065_v28, 0.0 }
 0x429   : > { %v1214_v33 = vrot.slane %v1213_v30, 4  ;;  %v1071_v36 = vpop.permute.xlu1 %1070 }
 0x42a   : > { %v1073_v37 = vadd.f32 %v1071_v36, %v1065_v28 }
 0x42b   : > { %v1215_v39 = vadd.f32 %v1214_v33, %v1213_v30 }
 0x42c   : > { %v1080_v40 = vadd.f32 %v2554_v31, %v1073_v37 }
 0x42d   : > { %v1216_v41 = vrot.slane %v1215_v39, 2 }
 0x42e   : > { %v1081_v42 = vmul.f32 0.17677669, %v1080_v40 }
 0x42f   : > { %v1217_v43 = vadd.f32 %v1216_v41, %v1215_v39  ;;  %v2609_v39 = vld [vmem:[%s724_s17] sm:$0xf] }
 0x430   : > { %v1082_v44 = vsel %vm861_vm6, %v1081_v42, -inf }
 0x431   : > { %v1218_v45 = vrot.slane %v1217_v43, 1  ;;  %1083 = vmax.xlane.f32.xlu0 %v1082_v44  ;;  %v2629_v44 = vld [vmem:[%s696_s24] sm:$0xff] }
 0x433   : > { %v1219_v49 = vadd.f32 %v1218_v45, %v1217_v43  ;;  %v745_v43 = vld [vmem:[%s2713_s15] sm:$0x1] }
 0x435   : > { %v2095_v50 = vmul.f32 -1.442695, %v1219_v49 }
 0x437   : > { %2270 = vpow2.f32 %v2095_v50 }
 0x444   : > { %v2271_v51 = vpop.eup %2270 }
 0x445   : > { %v1223_v52 = vadd.f32 1.0, %v2271_v51 }
 0x447   : > { %2272 = vrcp.f32 %v1223_v52 }
 0x454   : > { %v2569_v56 = vpop.eup %2272 }
 0x455   : > { %v1226_v57 = vsub.f32 1.0, %v2569_v56 }
 0x457   : > { %v1227_v58 = vmul.f32 %v1226_v57, %v1226_v57 }
 0x45e   : > { %1228 = vxpose.xlu0.b32.start.end [1/1] (short) (narrow) %v1227_v58, 8 }
 0x487   : > { %2265 = vset.pattern.permute.xlu0 %v2297_v6  ;;  %v1448_v6 = vadd.f32 %v857_v5, %v2500_v47 }
 0x489   : > { %v1449_v9 = vpack.c.bf16 %v1448_v6, %v1448_v6 }
 0x4ba   : > { %v1084_v60 = vpop.xlane.xlu0 %1083 }
 0x4bb   : > { %v1085_v62 = vsub.f32 %v1081_v42, %v1084_v60 }
 0x4bd   : > { %v1086_v63 = vmul.f32 1.442695, %v1085_v62 }
 0x4bf   : > { %2274 = vpow2.f32 %v1086_v63 }
 0x4cc   : > { %v2275_v3 = vpop.eup %2274 }
 0x4cd   : > { %v1088_v4 = vsel %vm861_vm6, %v2275_v3, 0.0 }
 0x4ce   : > { %1089 = vadd.xlane.f32.xlu1 %v1088_v4 }
 0x4da   : > { %v1244_v8 = vpop.trf.xlu0 }
 0x4db   : > { %2194 = vmatmul.mubr.msk.f32.vlgmr.msra.gmra.mxu1 %vm858_vm4, %v1244_v8 }
 0x4dc   : > { %2202 = vmatpush3.bf16.xpose.msra.mxu1 %v2397_v0  ;;  %2203 = vmatprep.mubr.msk.bf16.mxu1 %vm2295_vm0, %v2294_v1  ;;  %v1148_v0 = vpop.f32.mrf.mxu1 }
 0x4dd   : > { %2219 = vmatprep.subr.bf16.mxu1 %v2294_v1  ;;  %v1154_v50 = vmul.f32 %v1148_v0, %v2629_v44 }
 0x4de   : > { %v2183_v2 = vpop.f32.mrf.mxu1 }
 0x4e0   : > { %v1151_v38 = vpop.f32.mrf.mxu1 }
 0x4e2   : > { %v2184_v10 = vpop.f32.mrf.mxu1 }
 0x4e3   : > { %2204 = vmatmul.mubr.bf16.vlgmr.msra.gmra.mxu1 %v1449_v9 }
 0x4e4   : > { %2220 = vmatpush3.bf16.msra.mxu1 %v2518_v59  ;;  %2221 = vmatprep.mubr.msk.bf16.mxu1 %vm2295_vm0, %v2294_v1 }
 0x4e5   : > { %2231 = vmatprep.subr.bf16.mxu1 %v2294_v1 }
 0x4eb   : > { %2222 = vmatmul.mubr.msk.bf16.vlgmr.msra.gmra.mxu1 %vm861_vm6, %v2474_v32  ;;  %v740_v32 = vld [vmem:[%s708_s27] sm:$0xff]  ;;  %s728_s27 = scalar_lea.vmem %s2714_s16, %s2434_s0 }
 0x4ec   : > { %2233 = vmatprep.mubr.msk.bf16.mxu1 %vm2295_vm0, %v2294_v1 }
 0x557   : > { %v1090_v12 = vpop.xlane.xlu1 %1089 }
 0x558   : > { %2276 = vrcp.f32 %v1090_v12 }
 0x565   : > { %v2277_v13 = vpop.eup %2276 }
 0x566   : > { %v1092_v59 = vmul.f32 %v2277_v13, %v2275_v3 }
 0x568   : > { %v1093_v15 = vmul.f32 %v1092_v59, %v2530_v7 }
 0x56a   : > { %v1094_v16 = vsel %vm861_vm6, %v1093_v15, 0.0 }
 0x56b   : > { %1095 = vadd.xlane.f32.xlu1 %v1094_v16 }
 0x57c   : > { %913 = vrot.lane.b32.xlu1 %v740_v32, %s2299_s28 }
 0x59b   : > { %v2596_v17 = vpop.f32.mrf.mxu1 }
 0x59c   : > { %v1336_v13 = vmul.f32 %v2596_v17, %v2490_v35 }
 0x59d   : > { %v2195_v18 = vpop.f32.mrf.mxu1 }
 0x5a3   : > { %v1484_v19 = vpop.f32.mrf.mxu1 }
 0x5a4   : > { %v1490_v21 = vmul.f32 0.17677669, %v1484_v19 }
 0x5a5   : > { %v2205_v24 = vpop.f32.mrf.mxu1 }
 0x5a6   : > { %v1491_v7 = vsel %vm792_vm1, %v1490_v21, -inf }
 0x5a7   : > { %1492 = vmax.xlane.f32.xlu0 %v1491_v7  ;;  %v1487_v25 = vpop.f32.mrf.mxu1 }
 0x5a9   : > { %v2206_v26 = vpop.f32.mrf.mxu1 }
 0x5f4   : > { %v1096_v27 = vpop.xlane.xlu1 %1095 }
 0x5f5   : > { %v1097_v28 = vmul.f32 %v1096_v27, %v2539_v14 }
 0x5f7   : > { %v1098_v30 = vpack.c.bf16 %v1097_v28, %v1097_v28 }
 0x5f8   : > { %v2604_v33 = vpop.permute.xlu1 %913 }
 0x5f9   : > { %v1163_v36 = vsel %vm810_vm3, %v1098_v30, 0  ;;  %v916_v37 = vmul.f32 %v2604_v33, %v2496_v46 }
 0x5fa   : > { %2186 = vmatpush3.bf16.msra.mxu0 %v1163_v36  ;;  %v1446_v36 = vadd.f32 %v2509_v55, %v2440_v22 }
 0x5fb   : > { %1156 = vrot.lane.b32.xlu1 %v916_v37, %s2300_s18  ;;  %2196 = vmatprep.subr.mxu0 %v2294_v1 }
 0x5fd   : > { %2188 = vmatmul.mubr.msk.bf16.vlgmr.msra.gmra.mxu0 %vm861_vm6, %v2609_v39 }
 0x5fe   : > { %2198 = vmatprep.mubr.msk.f32.mxu0 %vm2295_vm0, %v2294_v1  ;;  %2197 = vmatpush3.msk.msra.mxu0 %vm1111_vm8, %v745_v43 }
 0x5ff   : > { %1209 = vrot.lane.b32.xlu1 %v1148_v0, %s2300_s18  ;;  %2207 = vmatprep.subr.bf16.mxu0 %v2294_v1 }
 0x630   : > { %v1493_v14 = vpop.xlane.xlu0 %1492 }
 0x631   : > { %v1494_v40 = vsub.f32 %v1490_v21, %v1493_v14 }
 0x633   : > { %v1495_v46 = vmul.f32 1.442695, %v1494_v40 }
 0x635   : > { %2278 = vpow2.f32 %v1495_v46 }
 0x642   : > { %v2279_v41 = vpop.eup %2278 }
 0x643   : > { %v1497_v42 = vsel %vm792_vm1, %v2279_v41, 0.0 }
 0x644   : > { %1498 = vadd.xlane.f32.xlu1 %v1497_v42 }
 0x66d   : > { %v1157_v45 = vpop.permute.xlu1 %1156 }
 0x671   : > { %v1210_v60 = vpop.permute.xlu1 %1209 }
 0x677   : > { %1337 = vxpose.xlu1.b32.start.end [1/1] (short) (narrow) %v2569_v56, 8 }
 0x6bd   : > { %v1199_v49 = vpop.f32.mrf.mxu0 }
 0x6be   : > { %v1200_v51 = vadd.f32 %v1199_v49, %v1157_v45 }
 0x6bf   : > { %v2189_v52 = vpop.f32.mrf.mxu0 }
 0x6c0   : > { %v1205_v54 = vadd.f32 %v1200_v51, %v1154_v50 }
 0x6c1   : > { %v1202_v57 = vpop.f32.mrf.mxu0 }
 0x6c2   : > { %v1206_v58 = vmul.f32 %v1205_v54, %v2509_v55 }
 0x6c3   : > { %v2190_v62 = vpop.f32.mrf.mxu0 }
 0x6c4   : > { %v2633_v63 = vadd.f32 %v1210_v60, %v1206_v58 }
 0x6c6   : > { %1548 = vrot.lane.b32.xlu0 %v2633_v63, %s2299_s28 }
 0x6cd   : > { %v1499_v56 = vpop.xlane.xlu1 %1498 }
 0x6ce   : > { %2280 = vrcp.f32 %v1499_v56 }
 0x6db   : > { %v2281_v3 = vpop.eup %2280 }
 0x6dc   : > { %v1501_v4 = vmul.f32 %v2281_v3, %v2279_v41 }
 0x6de   : > { %v1502_v8 = vpack.c.bf16 %v1501_v4, %v1501_v4 }
 0x6f3   : > { %v1353_v5 = vpop.trf.xlu1 }
 0x6f4   : > { %2199 = vmatmul.mubr.msk.f32.vlgmr.msra.gmra.mxu0 %vm858_vm4, %v1353_v5 }
 0x6f5   : > { %2208 = vmatpush3.bf16.msra.mxu0 %v2429_v20  ;;  %2209 = vmatprep.mubr.msk.bf16.mxu0 %vm2295_vm0, %v2294_v1  ;;  %v1635_v20 = vpop.f32.mrf.mxu1 }
 0x6f6   : > { %2213 = vmatprep.subr.bf16.mxu0 %v2294_v1  ;;  %v1685_v50 = vmul.f32 %v1635_v20, %v2536_v11 }
 0x6f7   : > { %v2223_v38 = vpop.f32.mrf.mxu1 }
 0x6f8   : > { %2210 = vmatmul.mubr.msk.bf16.vlgmr.msra.gmra.mxu0 %vm805_vm5, %v1502_v8 }
 0x6f9   : > { %2215 = vmatprep.mubr.msk.bf16.mxu0 %vm2295_vm0, %v2294_v1  ;;  %v1638_v10 = vpop.f32.mrf.mxu1 }
 0x6fb   : > { %v2224_v12 = vpop.f32.mrf.mxu1 }
 0x738   : > { %v1549_v6 = vpop.permute.xlu0 %1548 }
 0x739   : > { %v1551_v9 = vsel %vm858_vm4, %v2509_v55, %v1549_v6 }
 0x73a   : > { %v1552_v0 = vpack.c.bf16 %v1551_v9, %v1551_v9 }
 0x73c   : > { %v1554_v2 = vsel %vm810_vm3, %v1552_v0, 0 }
 0x73d   : > { %2214 = vmatpush3.bf16.msra.mxu0 %v1554_v2 }
 0x73e   : > { %2225 = vmatprep.subr.bf16.mxu0 %v2294_v1 }
 0x740   : > { %2216 = vmatmul.mubr.msk.bf16.vlgmr.msra.gmra.mxu0 %vm861_vm6, %v2456_v29 }
 0x741   : > { %2227 = vmatprep.mubr.msk.bf16.mxu0 %vm2295_vm0, %v2294_v1 }
 0x7b4   : > { %v1441_v59 = vpop.f32.mrf.mxu0 }
 0x7b5   : > { %v1445_v15 = vadd.f32 %v1441_v59, %v1336_v13 }
 0x7b6   : > { %v2200_v16 = vpop.f32.mrf.mxu0 }
 0x7b7   : > { %v1447_v32 = vpack.c.bf16 %v1445_v15, %v1445_v15  ;;  %v1761_v18 = vrot.slane %v1445_v15, 4 }
 0x7b8   : > { %v1540_v19 = vpop.f32.mrf.mxu0 }
 0x7b9   : > { %v1762_v21 = vadd.f32 %v1761_v18, %v1445_v15  ;;  %2232 = vmatpush3.bf16.xpose.msra.mxu1 %v1447_v32  ;;  %v1546_v26 = vadd.f32 %v1540_v19, %v2500_v47 }
 0x7ba   : > { %v2211_v24 = vpop.f32.mrf.mxu0  ;;  %2243 = vmatprep.subr.bf16.mxu1 %v2294_v1 }
 0x7bb   : > { %v1763_v29 = vrot.slane %v1762_v21, 2  ;;  %v1771_v17 = vrot.slane %v1546_v26, %v2502_v48 }
 0x7bc   : > { %v1543_v7 = vpop.f32.mrf.mxu0 }
 0x7bd   : > { %v1764_v25 = vadd.f32 %v1763_v29, %v1762_v21 }
 0x7be   : > { %v2212_v27 = vpop.f32.mrf.mxu0 }
 0x7bf   : > { %v1765_v28 = vrot.slane %v1764_v25, 1 }
 0x7c0   : > { %2234 = vmatmul.mubr.bf16.vlgmr.msra.gmra.mxu1 %v2485_v34 }
 0x7c1   : > { %v1766_v35 = vadd.f32 %v1765_v28, %v1764_v25  ;;  %2245 = vmatprep.mubr.msk.bf16.mxu1 %vm2295_vm0, %v2294_v1 }
 0x7c3   : > { %v1773_v30 = vsel %vm1111_vm8, %v1766_v35, %v1771_v17 }
 0x7c4   : > { %v1774_v43 = vpack.c.bf16 %v1773_v30, %v1773_v30 }
 0x800   : > { %v1590_v37 = vpop.f32.mrf.mxu0 }
 0x801   : > { %v1596_v14 = vadd.f32 %v1590_v37, %v1446_v36  ;;  %v1600_v13 = vmul.f32 %v1590_v37, %v2604_v33 }
 0x802   : > { %v2217_v40 = vpop.f32.mrf.mxu0 }
 0x803   : > { %vm1597_vm9 = vcmp.gt.f32.partialorder %v1596_v14, 0.0 }
 0x804   : > { %v1598_v47 = vsel %vm1597_vm9, 1.0, %v1596_v14  ;;  %v1593_v46 = vpop.f32.mrf.mxu0 }
 0x805   : > { %v2664_v41 = vsub.f32 %v1598_v47, %v1446_v36 }
 0x806   : > { %v2218_v34 = vpop.f32.mrf.mxu0 }
 0x807   : > { %v1641_v48 = vpack.c.bf16 %v2664_v41, %v2664_v41 }
 0x809   : > { %v1643_v42 = vsel %vm810_vm3, %v1641_v48, 0 }
 0x80a   : > { %2226 = vmatpush3.bf16.msra.mxu0 %v1643_v42 }
 0x80b   : > { %2237 = vmatprep.subr.bf16.mxu0 %v2294_v1 }
 0x80d   : > { %2228 = vmatmul.mubr.msk.bf16.vlgmr.msra.gmra.mxu0 %vm861_vm6, %v2522_v61 }
 0x80e   : > { %2238 = vmatpush3.bf16.xpose.msra.mxu0 %v1774_v43  ;;  %2239 = vmatprep.mubr.msk.bf16.mxu0 %vm2295_vm0, %v2294_v1 }
 0x815   : > { %2240 = vmatmul.mubr.bf16.vlgmr.msra.gmra.mxu0 %v2562_v53 }
 0x880   : > { %v1721_v22 = vpop.f32.mrf.mxu1 }
 0x881   : > { %v1727_v62 = vmul.f32 %v1721_v22, %v2548_v23 }
 0x882   : > { %v2235_v55 = vpop.f32.mrf.mxu1 }
 0x884   : > { %v1724_v45 = vpop.f32.mrf.mxu1 }
 0x886   : > { %v2236_v49 = vpop.f32.mrf.mxu1 }
 0x8cd   : > { %v1679_v51 = vpop.f32.mrf.mxu0 }
 0x8ce   : > { %v1686_v52 = vmul.f32 %v1685_v50, %v1679_v51 }
 0x8cf   : > { %v2229_v54 = vpop.f32.mrf.mxu0 }
 0x8d0   : > { %1730 = vperm.xlu0 %2265, %v1686_v52   ;;  %v1734_v57 = vsub.f32 1.0, %v1686_v52 }
 0x8d1   : > { %v1682_v58 = vpop.f32.mrf.mxu0 }
 0x8d2   : > { %v1735_v60 = vmul.f32 -1e+10, %v1734_v57 }
 0x8d3   : > { %v2230_v61 = vpop.f32.mrf.mxu0 }
 0x8d4   : > { %1738 = vperm.xlu0 %2265, %v1735_v60  }
 0x94b   : > { %v1731_v1 = vpop.permute.xlu0 %1730 }
 0x94c   : > { %v1733_v56 = vmul.f32 %v1731_v1, %v1727_v62 }
 0x94f   : > { %v1739_v53 = vpop.permute.xlu0 %1738 }
 0x950   : > { %v1741_v3 = vadd.f32 %v1739_v53, %v1733_v56 }
 0x952   : > { %v1742_v4 = vadd.f32 %v1741_v3, %v2554_v31  ;;  %v1809_v31 = vpop.f32.mrf.mxu0 }
 0x953   : > { %v1815_v25 = vmul.f32 %v1809_v31, %v2629_v44 }
 0x954   : > { %v1743_v5 = vmul.f32 0.17677669, %v1742_v4  ;;  %v2241_v59 = vpop.f32.mrf.mxu0 }
 0x956   : > { %v1744_v11 = vsel %vm861_vm6, %v1743_v5, -inf  ;;  %v1812_v15 = vpop.f32.mrf.mxu0 }
 0x957   : > { %1745 = vmax.xlane.f32.xlu0 %v1744_v11 }
 0x958   : > { %v2242_v16 = vpop.f32.mrf.mxu0 }
 0x9e0   : > { %v1746_v8 = vpop.xlane.xlu0 %1745 }
 0x9e1   : > { %v1747_v6 = vsub.f32 %v1743_v5, %v1746_v8 }
 0x9e3   : > { %v1748_v9 = vmul.f32 1.442695, %v1747_v6 }
 0x9e5   : > { %2282 = vpow2.f32 %v1748_v9 }
 0x9f2   : > { %v2283_v0 = vpop.eup %2282 }
 0x9f3   : > { %v1750_v2 = vsel %vm861_vm6, %v2283_v0, 0.0 }
 0x9f4   : > { %1751 = vadd.xlane.f32.xlu1 %v1750_v2 }
 0xa7d   : > { %v1752_v20 = vpop.xlane.xlu1 %1751 }
 0xa7e   : > { %2284 = vrcp.f32 %v1752_v20 }
 0xa8b   : > { %v2285_v23 = vpop.eup %2284 }
 0xa8c   : > { %v1754_v38 = vmul.f32 %v2285_v23, %v2283_v0 }
 0xa8e   : > { %v1755_v10 = vmul.f32 %v1754_v38, %v1721_v22 }
 0xa90   : > { %v1756_v12 = vsel %vm861_vm6, %v1755_v10, 0.0 }
 0xa91   : > { %1757 = vadd.xlane.f32.xlu0 %v1756_v12 }
 0xaa7   : > { %1817 = vrot.lane.b32.xlu0 %v1600_v13, %s2300_s18 }
 0xaab   : > { %1868 = vrot.lane.b32.xlu0 %v1809_v31, %s2300_s18 }
 0xb1a   : > { %v1758_v32 = vpop.xlane.xlu0 %1757 }
 0xb1b   : > { %v1759_v18 = vmul.f32 %v1758_v32, %v1686_v52 }
 0xb1d   : > { %v1760_v19 = vpack.c.bf16 %v1759_v18, %v1759_v18 }
 0xb1e   : > { %v1818_v24 = vpop.permute.xlu0 %1817 }
 0xb1f   : > { %v1821_v21 = vsel %vm810_vm3, %v1760_v19, 0 }
 0xb20   : > { %2244 = vmatpush3.bf16.msra.mxu1 %v1821_v21 }
 0xb22   : > { %v1869_v30 = vpop.permute.xlu0 %1868 }
 0xb23   : > { %2246 = vmatmul.mubr.msk.bf16.vlgmr.msra.gmra.mxu1 %vm861_vm6, %v2609_v39 }
 0xbe3   : > { %v1857_v29 = vpop.f32.mrf.mxu1 }
 0xbe4   : > { %v1858_v33 = vadd.f32 %v1857_v29, %v1818_v24 }
 0xbe5   : > { %v2247_v7 = vpop.f32.mrf.mxu1 }
 0xbe6   : > { %v1863_v26 = vmul.f32 0.5, %v1858_v33 }
 0xbe7   : > { %v1860_v27 = vpop.f32.mrf.mxu1 }
 0xbe8   : > { %v1864_v28 = vadd.f32 %v1863_v26, %v1815_v25 }
 0xbe9   : > { %v2248_v35 = vpop.f32.mrf.mxu1 }
 0xbea   : > { %v1865_v17 = vmul.f32 %v1864_v28, %v2664_v41 }
 0xbec   : > { %v1866_v36 = vadd.f32 %v1865_v17, %v2633_v63 }
 0xbee   : > { %v1871_v39 = vadd.f32 %v1869_v30, %v1866_v36 }
 0xbf0   : > { %1872 = vst.msk [vmem:[%s728_s27] sm:$0xff] %vm858_vm4, %v1871_v39 }
 0xbf1 PF: > { %s26_s21 = sadd.s32 1, %s2292_s21  }
 0xbf2   : > { %p23_p4 = scmp.ge.s32.totalorder %s26_s21, 4  }
 0xbf4   :  { %25 = sbr.rel (!%p23_p4) target bundleno = 2 (0x2), region = 153 }

</bundles_post_ra>
